<compile_context>
chip_gen: v6e
topology: v6e:2x2x1
jax: 0.10.0
libtpu: 0.0.40
codegen_flags: <defaults>
</compile_context>

<pallas_src>
import functools

import jax
import jax.numpy as jnp
from jax import lax
from jax.experimental import pallas as pl
from jax.experimental.pallas import tpu as pltpu


# ----------------------------------------------------------------------------- #
# Small helpers
# ----------------------------------------------------------------------------- #
def _round_up(x, m):
    return ((x + m - 1) // m) * m


def _weight_spec(shape, index_map, single_buffer):
    """BlockSpec for a grid-invariant operand.

    With single_buffer=True we request a single VMEM buffer (the index_map is
    constant, so the default double buffering only wastes VMEM).
    """
    if single_buffer:
        return pl.BlockSpec(shape, index_map, pipeline_mode=pl.Buffered(1))
    return pl.BlockSpec(shape, index_map)


def _vmem_limit_bytes(footprint_bytes):
    # Explicit scoped-VMEM limit: generous margin over the per-step block footprint,
    # capped at 64 MiB so it stays legal on every TPU generation (incl. v7x).
    return int(min(3 * footprint_bytes + (16 << 20), 64 << 20))


def _gru_gates(gi, gh, h, H):
    """PyTorch GRUCell gate math (f32), given the two pre-activation (.., 3H) blocks."""
    r = jax.nn.sigmoid(gi[:, 0 * H:1 * H] + gh[:, 0 * H:1 * H])
    z = jax.nn.sigmoid(gi[:, 1 * H:2 * H] + gh[:, 1 * H:2 * H])
    n = jnp.tanh(gi[:, 2 * H:3 * H] + r * gh[:, 2 * H:3 * H])
    return (1.0 - z) * n + z * h


# ----------------------------------------------------------------------------- #
# Kernel 1: single step (done is None), batch tiled on a "parallel" grid axis.
# ----------------------------------------------------------------------------- #
def rnn_step_kernel(obs_ref, h_ref, w1_ref, b1_ref, wih_ref, whh_ref,
                    bih_ref, bhh_ref, w2_ref, b2_ref,
                    out_ref, hnew_ref, *, hidden, n_outputs, use_softmax):
    H = hidden
    wdt = w1_ref.dtype                                  # bf16 (or f32) matmul operand dtype

    x = jnp.tanh(jnp.dot(obs_ref[...].astype(wdt), w1_ref[...],
                         preferred_element_type=jnp.float32) + b1_ref[...])
    h = h_ref[...]
    gi = jnp.dot(x.astype(wdt), wih_ref[...],
                 preferred_element_type=jnp.float32) + bih_ref[...]
    gh = jnp.dot(h.astype(wdt), whh_ref[...],
                 preferred_element_type=jnp.float32) + bhh_ref[...]
    h_new = _gru_gates(gi, gh, h, H)

    q = jnp.dot(h_new.astype(wdt), w2_ref[...],
                preferred_element_type=jnp.float32) + b2_ref[...]
    if use_softmax:
        lane = lax.broadcasted_iota(jnp.int32, q.shape, 1)
        q = jax.nn.softmax(jnp.where(lane < n_outputs, q, -1e30), axis=-1)

    out_ref[...] = q
    hnew_ref[...] = h_new


def _rnn_step_call(params, obs, hidden_state, *, use_softmax, single_buffer_weights):
    B, S = obs.shape
    H = params["w_hh"].shape[0]
    O = params["w2"].shape[1]
    assert hidden_state.shape == (B, H)
    assert H % 128 == 0, "n_hiddens must be a multiple of 128 (lane-aligned gate slices)"

    # Lane-dense output head: zero-pad fc2 to a multiple of 128 output lanes.
    O_pad = _round_up(max(O, 128), 128)
    w2p = jnp.pad(params["w2"], ((0, 0), (0, O_pad - O)))
    b2p = jnp.pad(params["b2"], ((0, 0), (0, O_pad - O)))

    # MXU-aligned batch tile: multiple of 8, capped at 256 rows.  If that leaves a
    # single grid step and the batch can be split, halve the tile so the "parallel"
    # axis has >= 2 steps (v7x megacore).
    B8 = _round_up(B, 8)
    bm = min(B8, 256)
    if B8 // bm < 2 and bm > 8:
        bm = max(8, _round_up(bm // 2, 8) if (bm // 2) % 8 == 0 else _round_up(bm // 2, 8))
    B_pad = _round_up(B, bm)
    grid = (B_pad // bm,)

    obs_p = jnp.pad(obs, ((0, B_pad - B), (0, 0))) if B_pad != B else obs
    h_p = jnp.pad(hidden_state, ((0, B_pad - B), (0, 0))) if B_pad != B else hidden_state

    batch = lambda shape: pl.BlockSpec(shape, lambda i: (i, 0))
    const = lambda shape: _weight_spec(shape, lambda i: (0, 0), single_buffer_weights)

    wbytes = jnp.dtype(params["w1"].dtype).itemsize
    footprint = (bm * S * 4 + bm * H * 4                                  # obs, hidden blocks
                 + (S * H + 2 * H * 3 * H + H * O_pad) * wbytes           # weights
                 + (H + 2 * 3 * H + O_pad) * 4                            # biases
                 + bm * O_pad * 4 + bm * H * 4)                           # outputs

    cost = pl.CostEstimate(
        flops=2 * B_pad * (S * H + 2 * H * 3 * H + H * O_pad),
        transcendentals=4 * B_pad * H + (B_pad * O_pad if use_softmax else 0),
        bytes_accessed=footprint * grid[0],
    )

    q_pad, h_new = pl.pallas_call(
        functools.partial(rnn_step_kernel, hidden=H, n_outputs=O,
                          use_softmax=use_softmax),
        out_shape=(jax.ShapeDtypeStruct((B_pad, O_pad), jnp.float32),
                   jax.ShapeDtypeStruct((B_pad, H), jnp.float32)),
        grid_spec=pltpu.PrefetchScalarGridSpec(
            num_scalar_prefetch=0,
            grid=grid,
            in_specs=[
                batch((bm, S)),                  # obs
                batch((bm, H)),                  # hidden
                const((S, H)),                   # w1
                const((1, H)),                   # b1
                const((H, 3 * H)),               # w_ih
                const((H, 3 * H)),               # w_hh
                const((1, 3 * H)),               # b_ih
                const((1, 3 * H)),               # b_hh
                const((H, O_pad)),               # w2 (lane-padded)
                const((1, O_pad)),               # b2 (lane-padded)
            ],
            out_specs=[
                batch((bm, O_pad)),              # q (lane-dense slab store)
                batch((bm, H)),                  # new hidden
            ],
        ),
        compiler_params=pltpu.CompilerParams(
            dimension_semantics=("parallel",),
            vmem_limit_bytes=_vmem_limit_bytes(footprint),
        ),
        cost_estimate=cost,
    )(obs_p, h_p,
      params["w1"], params["b1"],
      params["w_ih"], params["w_hh"], params["b_ih"], params["b_hh"],
      w2p, b2p)

    return q_pad[:B, :O], h_new[:B]


def rnn_step(params, obs, hidden_state, *, use_softmax=False):
    try:
        return _rnn_step_call(params, obs, hidden_state, use_softmax=use_softmax,
                              single_buffer_weights=True)
    except Exception:
        # Fallback if this JAX build rejects pl.Buffered on pallas_call BlockSpecs;
        # identical semantics, weights are just double-buffered.
        return _rnn_step_call(params, obs, hidden_state, use_softmax=use_softmax,
                              single_buffer_weights=False)


# ----------------------------------------------------------------------------- #
# Kernel 2: sequential rollout with done-masking (done is not None).
# T is tiled on an "arbitrary" grid; the hidden state carries in the resident
# (1, H) output block; only gh = h @ w_hh is sequential.
# ----------------------------------------------------------------------------- #
def rnn_rollout_kernel(nd_ref,                       # scalar-prefetch SMEM, (T,) = 1 - done
                       obs_ref, h0_ref, w1_ref, b1_ref, wih_ref, whh_ref,
                       bih_ref, bhh_ref, w2_ref, b2_ref,
                       q_ref, hout_ref,
                       gi_scratch, h_all,
                       *, hidden, t_tile, n_outputs, use_softmax):
    H = hidden
    wdt = w1_ref.dtype

    @pl.when(pl.program_id(0) == 0)
    def _():
        hout_ref[...] = h0_ref[...]                  # seed the carried hidden state

    # ---- batched prologue for this tile: x_t and gi_t (two MXU matmuls, M = t_tile) ----
    x = jnp.tanh(jnp.dot(obs_ref[...].astype(wdt), w1_ref[...],
                         preferred_element_type=jnp.float32) + b1_ref[...])   # (t_tile, H)
    gi_scratch[...] = (jnp.dot(x.astype(wdt), wih_ref[...],
                               preferred_element_type=jnp.float32)
                       + bih_ref[...])                                        # (t_tile, 3H)

    # ---- sequential recurrence: only gh_t = h @ w_hh per step ----
    # Further micro-opt (not applied): keep w_hh stationary in the MXU via
    # pltpu.matmul_push_rhs / matmul_acc_lhs / matmul_pop across the unrolled loop.
    w_hh = whh_ref[...]                              # hoisted loads
    b_hh = bhh_ref[...]
    base = pl.program_id(0) * t_tile

    def body(t, h):
        gi = gi_scratch[pl.ds(t, 1), :]                                        # (1, 3H)
        gh = jnp.dot(h.astype(wdt), w_hh,
                     preferred_element_type=jnp.float32) + b_hh                # (1, 3H)
        h_new = _gru_gates(gi, gh, h, H)
        h_all[pl.ds(t, 1), :] = h_new        # pre-mask hidden feeds the output projection
        return h_new * nd_ref[base + t]      # only the carried state is masked

    h_last = lax.fori_loop(0, t_tile, body, hout_ref[...], unroll=True)
    hout_ref[...] = h_last                   # persists across grid steps (constant index)

    # ---- batched epilogue: one (t_tile, H) x (H, O_pad) matmul, single lane-dense store ----
    q = jnp.dot(h_all[...].astype(wdt), w2_ref[...],
                preferred_element_type=jnp.float32) + b2_ref[...]
    if use_softmax:
        lane = lax.broadcasted_iota(jnp.int32, q.shape, 1)
        q = jax.nn.softmax(jnp.where(lane < n_outputs, q, -1e30), axis=-1)
    q_ref[...] = q


def _choose_t_tile(T):
    if T <= 128:
        return T
    for cand in (128, 64, 32, 16, 8):
        if T % cand == 0:
            return cand
    return T


def _rnn_rollout_call(params, obs_seq, hidden_state, done, *, use_softmax,
                      single_buffer_weights):
    # obs_seq: (T, n_states), hidden_state: (1, H), done: (T,)
    T, S = obs_seq.shape
    H = params["w_hh"].shape[0]
    O = params["w2"].shape[1]
    assert hidden_state.shape == (1, H)
    assert H % 128 == 0, "n_hiddens must be a multiple of 128 (lane-aligned gate slices)"

    O_pad = _round_up(max(O, 128), 128)
    w2p = jnp.pad(params["w2"], ((0, 0), (0, O_pad - O)))
    b2p = jnp.pad(params["b2"], ((0, 0), (0, O_pad - O)))

    not_done = (1.0 - done.reshape(T)).astype(jnp.float32)   # hoisted mask

    t_tile = _choose_t_tile(T)
    grid = (T // t_tile,)

    const = lambda shape: _weight_spec(shape, lambda i, nd: (0, 0), single_buffer_weights)

    wbytes = jnp.dtype(params["w1"].dtype).itemsize
    footprint = (t_tile * S * 4 + H * 4
                 + (S * H + 2 * H * 3 * H + H * O_pad) * wbytes
                 + (H + 2 * 3 * H + O_pad) * 4
                 + t_tile * O_pad * 4 + H * 4
                 + t_tile * 3 * H * 4 + t_tile * H * 4)       # gi + h_all scratch

    cost = pl.CostEstimate(
        flops=2 * T * (S * H + 2 * H * 3 * H + H * O_pad),
        transcendentals=4 * T * H + (T * O_pad if use_softmax else 0),
        bytes_accessed=footprint * grid[0],
    )

    q_pad, h_last = pl.pallas_call(
        functools.partial(rnn_rollout_kernel, hidden=H, t_tile=t_tile,
                          n_outputs=O, use_softmax=use_softmax),
        out_shape=(jax.ShapeDtypeStruct((T, O_pad), jnp.float32),
                   jax.ShapeDtypeStruct((1, H), jnp.float32)),
        grid_spec=pltpu.PrefetchScalarGridSpec(
            num_scalar_prefetch=1,
            grid=grid,
            in_specs=[
                pl.BlockSpec((t_tile, S), lambda i, nd: (i, 0)),   # obs tile (pipelined)
                const((1, H)),                                     # h0
                const((S, H)),                                     # w1
                const((1, H)),                                     # b1
                const((H, 3 * H)),                                 # w_ih
                const((H, 3 * H)),                                 # w_hh
                const((1, 3 * H)),                                 # b_ih
                const((1, 3 * H)),                                 # b_hh
                const((H, O_pad)),                                 # w2 (lane-padded)
                const((1, O_pad)),                                 # b2 (lane-padded)
            ],
            out_specs=[
                pl.BlockSpec((t_tile, O_pad), lambda i, nd: (i, 0)),  # q tile (lane-dense)
                pl.BlockSpec((1, H), lambda i, nd: (0, 0)),           # carried / final hidden
            ],
            scratch_shapes=[
                pltpu.VMEM((t_tile, 3 * H), jnp.float32),   # gi for this tile
                pltpu.VMEM((t_tile, H), jnp.float32),       # pre-mask hidden states
            ],
        ),
        compiler_params=pltpu.CompilerParams(
            dimension_semantics=("arbitrary",),
            vmem_limit_bytes=_vmem_limit_bytes(footprint),
        ),
        cost_estimate=cost,
    )(not_done, obs_seq, hidden_state,
      params["w1"], params["b1"],
      params["w_ih"], params["w_hh"], params["b_ih"], params["b_hh"],
      w2p, b2p)

    return q_pad[:, :O], h_last


def rnn_rollout(params, obs_seq, hidden_state, done, *, use_softmax=False):
    try:
        return _rnn_rollout_call(params, obs_seq, hidden_state, done,
                                 use_softmax=use_softmax, single_buffer_weights=True)
    except Exception:
        # Fallback if this JAX build rejects pl.Buffered on pallas_call BlockSpecs.
        return _rnn_rollout_call(params, obs_seq, hidden_state, done,
                                 use_softmax=use_softmax, single_buffer_weights=False)


# ----------------------------------------------------------------------------- #
# Pure-JAX reference (mirrors the PyTorch module; f32 math on the stored weights)
# ----------------------------------------------------------------------------- #
def _ref_step(params, obs, h, use_softmax=False):
    p = {k: v.astype(jnp.float32) for k, v in params.items()}
    H = p["w_hh"].shape[0]
    x = jnp.tanh(obs @ p["w1"] + p["b1"])
    gi = x @ p["w_ih"] + p["b_ih"]
    gh = h @ p["w_hh"] + p["b_hh"]
    h_new = _gru_gates(gi, gh, h, H)
    q = h_new @ p["w2"] + p["b2"]
    if use_softmax:
        q = jax.nn.softmax(q, axis=-1)
    return q, h_new


def _ref_rollout(params, obs_seq, h, done, use_softmax=False):
    qs = []
    for t in range(obs_seq.shape[0]):
        q, h = _ref_step(params, obs_seq[t:t + 1], h, use_softmax)
        h = h * (1.0 - done[t])
        qs.append(q)
    return jnp.concatenate(qs, axis=0), h


# ----------------------------------------------------------------------------- #
# Parameter init (deterministic, synthetic).  Matmul weights stored in bf16,
# biases in f32 (all gate math stays f32 inside the kernels).
# ----------------------------------------------------------------------------- #
def make_params(key, n_states, n_hiddens, n_outputs, weight_dtype=jnp.bfloat16):
    ks = jax.random.split(key, 8)
    s = 0.1
    f = jax.random.normal
    return {
        "w1":   (s * f(ks[0], (n_states, n_hiddens), jnp.float32)).astype(weight_dtype),
        "b1":    s * f(ks[1], (1, n_hiddens), jnp.float32),
        "w_ih": (s * f(ks[2], (n_hiddens, 3 * n_hiddens), jnp.float32)).astype(weight_dtype),
        "w_hh": (s * f(ks[3], (n_hiddens, 3 * n_hiddens), jnp.float32)).astype(weight_dtype),
        "b_ih":  s * f(ks[4], (1, 3 * n_hiddens), jnp.float32),
        "b_hh":  s * f(ks[5], (1, 3 * n_hiddens), jnp.float32),
        "w2":   (s * f(ks[6], (n_hiddens, n_outputs), jnp.float32)).astype(weight_dtype),
        "b2":    s * f(ks[7], (1, n_outputs), jnp.float32),
    }


if __name__ == "__main__":
    B, T = 8, 8
    n_states, n_hiddens, n_outputs = 32, 128, 16

    key = jax.random.PRNGKey(0)
    kp, ko, kh, ks, kd = jax.random.split(key, 5)
    params = make_params(kp, n_states, n_hiddens, n_outputs)

    # --- done is None branch: batched single step ---
    obs = jax.random.normal(ko, (B, n_states), jnp.float32)
    hidden = jax.random.normal(kh, (B, n_hiddens), jnp.float32)
    q, h_new = rnn_step(params, obs, hidden, use_softmax=False)
    q, h_new = jax.block_until_ready((q, h_new))
    q_ref, h_ref = _ref_step(params, obs, hidden)
    assert q.shape == (B, n_outputs) and h_new.shape == (B, n_hiddens)
    assert jnp.allclose(q, q_ref, atol=2e-2), "step output mismatch"
    assert jnp.allclose(h_new, h_ref, atol=2e-2), "step hidden mismatch"

    # --- done is None branch with softmax head ---
    q_sm, _ = rnn_step(params, obs, hidden, use_softmax=True)
    q_sm = jax.block_until_ready(q_sm)
    q_sm_ref, _ = _ref_step(params, obs, hidden, use_softmax=True)
    assert jnp.allclose(q_sm, q_sm_ref, atol=2e-2), "step softmax mismatch"
    assert jnp.allclose(jnp.sum(q_sm, axis=-1), 1.0, atol=1e-3), "softmax not normalized"

    # --- done branch: sequential rollout with masking, batch 1 ---
    obs_seq = jax.random.normal(ks, (T, n_states), jnp.float32)
    done = (jax.random.uniform(kd, (T,)) > 0.7).astype(jnp.float32)
    h0 = jnp.zeros((1, n_hiddens), jnp.float32)
    q_seq, h_last = rnn_rollout(params, obs_seq, h0, done, use_softmax=False)
    q_seq, h_last = jax.block_until_ready((q_seq, h_last))
    q_seq_ref, h_last_ref = _ref_rollout(params, obs_seq, h0, done)
    assert q_seq.shape == (T, n_outputs) and h_last.shape == (1, n_hiddens)
    assert jnp.allclose(q_seq, q_seq_ref, atol=3e-2), "rollout output mismatch"
    assert jnp.allclose(h_last, h_last_ref, atol=3e-2), "rollout hidden mismatch"

    print("KERNEL_OK")
</pallas_src>

<mosaic_0001>
module attributes {stable_mosaic.version = 11 : i64} {
  func.func @rnn_step_kernel(%arg0: i32, %arg1: memref<8x32xf32, #tpu.memory_space<vmem>>, %arg2: memref<8x128xf32, #tpu.memory_space<vmem>>, %arg3: memref<32x128xbf16, #tpu.memory_space<vmem>>, %arg4: memref<1x128xf32, #tpu.memory_space<vmem>>, %arg5: memref<128x384xbf16, #tpu.memory_space<vmem>>, %arg6: memref<128x384xbf16, #tpu.memory_space<vmem>>, %arg7: memref<1x384xf32, #tpu.memory_space<vmem>>, %arg8: memref<1x384xf32, #tpu.memory_space<vmem>>, %arg9: memref<128x128xbf16, #tpu.memory_space<vmem>>, %arg10: memref<1x128xf32, #tpu.memory_space<vmem>>, %arg11: memref<8x128xf32, #tpu.memory_space<vmem>>, %arg12: memref<8x128xf32, #tpu.memory_space<vmem>>) attributes {dimension_semantics = [#tpu.dimension_semantics<parallel>], iteration_bounds = array<i64: 1>, scalar_prefetch = 0 : i64, scratch_operands = 0 : i64, tpu.core_type = #tpu.core_type<tc>, window_params = [{transform_indices = @transform_0, window_bounds = array<i64: 8, 32>}, {transform_indices = @transform_1, window_bounds = array<i64: 8, 128>}, {pipeline_mode = #tpu.pipeline_mode<synchronous>, transform_indices = @transform_2, window_bounds = array<i64: 32, 128>}, {pipeline_mode = #tpu.pipeline_mode<synchronous>, transform_indices = @transform_3, window_bounds = array<i64: 1, 128>}, {pipeline_mode = #tpu.pipeline_mode<synchronous>, transform_indices = @transform_4, window_bounds = array<i64: 128, 384>}, {pipeline_mode = #tpu.pipeline_mode<synchronous>, transform_indices = @transform_5, window_bounds = array<i64: 128, 384>}, {pipeline_mode = #tpu.pipeline_mode<synchronous>, transform_indices = @transform_6, window_bounds = array<i64: 1, 384>}, {pipeline_mode = #tpu.pipeline_mode<synchronous>, transform_indices = @transform_7, window_bounds = array<i64: 1, 384>}, {pipeline_mode = #tpu.pipeline_mode<synchronous>, transform_indices = @transform_8, window_bounds = array<i64: 128, 128>}, {pipeline_mode = #tpu.pipeline_mode<synchronous>, transform_indices = @transform_9, window_bounds = array<i64: 1, 128>}, {transform_indices = @transform_10, window_bounds = array<i64: 8, 128>}, {transform_indices = @transform_11, window_bounds = array<i64: 8, 128>}]} {
    %c0 = arith.constant 0 : index
    %c0_0 = arith.constant 0 : index
    %0 = vector.load %arg1[%c0, %c0_0] : memref<8x32xf32, #tpu.memory_space<vmem>>, vector<8x32xf32>
    %1 = arith.truncf %0 : vector<8x32xf32> to vector<8x32xbf16>
    %c0_1 = arith.constant 0 : index
    %c0_2 = arith.constant 0 : index
    %2 = vector.load %arg3[%c0_1, %c0_2] : memref<32x128xbf16, #tpu.memory_space<vmem>>, vector<32x128xbf16>
    %cst = arith.constant dense<0.000000e+00> : vector<8x128xf32>
    %3 = tpu.matmul %1, %2, %cst {dimension_numbers = #tpu.dot_dimension_numbers<[1], [0], [0], [1], [0, 0, 1, 1], [], []>} : vector<8x32xbf16>, vector<32x128xbf16>, vector<8x128xf32> -> vector<8x128xf32>
    %c0_3 = arith.constant 0 : index
    %c0_4 = arith.constant 0 : index
    %4 = vector.load %arg4[%c0_3, %c0_4] : memref<1x128xf32, #tpu.memory_space<vmem>>, vector<1x128xf32>
    %5 = vector.broadcast %4 : vector<1x128xf32> to vector<8x128xf32>
    %6 = arith.addf %3, %5 : vector<8x128xf32>
    %7 = math.tanh %6 : vector<8x128xf32>
    %c0_5 = arith.constant 0 : index
    %c0_6 = arith.constant 0 : index
    %8 = vector.load %arg2[%c0_5, %c0_6] : memref<8x128xf32, #tpu.memory_space<vmem>>, vector<8x128xf32>
    %9 = arith.truncf %7 : vector<8x128xf32> to vector<8x128xbf16>
    %c0_7 = arith.constant 0 : index
    %c0_8 = arith.constant 0 : index
    %10 = vector.load %arg5[%c0_7, %c0_8] : memref<128x384xbf16, #tpu.memory_space<vmem>>, vector<128x384xbf16>
    %cst_9 = arith.constant dense<0.000000e+00> : vector<8x384xf32>
    %11 = tpu.matmul %9, %10, %cst_9 {dimension_numbers = #tpu.dot_dimension_numbers<[1], [0], [0], [1], [0, 0, 1, 1], [], []>} : vector<8x128xbf16>, vector<128x384xbf16>, vector<8x384xf32> -> vector<8x384xf32>
    %c0_10 = arith.constant 0 : index
    %c0_11 = arith.constant 0 : index
    %12 = vector.load %arg7[%c0_10, %c0_11] : memref<1x384xf32, #tpu.memory_space<vmem>>, vector<1x384xf32>
    %13 = vector.broadcast %12 : vector<1x384xf32> to vector<8x384xf32>
    %14 = arith.addf %11, %13 : vector<8x384xf32>
    %15 = arith.truncf %8 : vector<8x128xf32> to vector<8x128xbf16>
    %c0_12 = arith.constant 0 : index
    %c0_13 = arith.constant 0 : index
    %16 = vector.load %arg6[%c0_12, %c0_13] : memref<128x384xbf16, #tpu.memory_space<vmem>>, vector<128x384xbf16>
    %cst_14 = arith.constant dense<0.000000e+00> : vector<8x384xf32>
    %17 = tpu.matmul %15, %16, %cst_14 {dimension_numbers = #tpu.dot_dimension_numbers<[1], [0], [0], [1], [0, 0, 1, 1], [], []>} : vector<8x128xbf16>, vector<128x384xbf16>, vector<8x384xf32> -> vector<8x384xf32>
    %c0_15 = arith.constant 0 : index
    %c0_16 = arith.constant 0 : index
    %18 = vector.load %arg8[%c0_15, %c0_16] : memref<1x384xf32, #tpu.memory_space<vmem>>, vector<1x384xf32>
    %19 = vector.broadcast %18 : vector<1x384xf32> to vector<8x384xf32>
    %20 = arith.addf %17, %19 : vector<8x384xf32>
    %21 = vector.extract_strided_slice %14 {offsets = [0, 0], sizes = [8, 128], strides = [1, 1]} : vector<8x384xf32> to vector<8x128xf32>
    %22 = vector.extract_strided_slice %20 {offsets = [0, 0], sizes = [8, 128], strides = [1, 1]} : vector<8x384xf32> to vector<8x128xf32>
    %23 = arith.addf %21, %22 : vector<8x128xf32>
    %24 = arith.negf %23 : vector<8x128xf32>
    %25 = math.exp %24 : vector<8x128xf32>
    %cst_17 = arith.constant 1.000000e+00 : f32
    %26 = vector.broadcast %cst_17 : f32 to vector<8x128xf32>
    %27 = arith.addf %26, %25 : vector<8x128xf32>
    %28 = arith.divf %26, %27 : vector<8x128xf32>
    %29 = vector.extract_strided_slice %14 {offsets = [0, 128], sizes = [8, 128], strides = [1, 1]} : vector<8x384xf32> to vector<8x128xf32>
    %30 = vector.extract_strided_slice %20 {offsets = [0, 128], sizes = [8, 128], strides = [1, 1]} : vector<8x384xf32> to vector<8x128xf32>
    %31 = arith.addf %29, %30 : vector<8x128xf32>
    %32 = arith.negf %31 : vector<8x128xf32>
    %33 = math.exp %32 : vector<8x128xf32>
    %cst_18 = arith.constant 1.000000e+00 : f32
    %34 = vector.broadcast %cst_18 : f32 to vector<8x128xf32>
    %35 = arith.addf %34, %33 : vector<8x128xf32>
    %36 = arith.divf %34, %35 : vector<8x128xf32>
    %37 = vector.extract_strided_slice %14 {offsets = [0, 256], sizes = [8, 128], strides = [1, 1]} : vector<8x384xf32> to vector<8x128xf32>
    %38 = vector.extract_strided_slice %20 {offsets = [0, 256], sizes = [8, 128], strides = [1, 1]} : vector<8x384xf32> to vector<8x128xf32>
    %39 = arith.mulf %28, %38 : vector<8x128xf32>
    %40 = arith.addf %37, %39 : vector<8x128xf32>
    %41 = math.tanh %40 : vector<8x128xf32>
    %cst_19 = arith.constant 1.000000e+00 : f32
    %42 = vector.broadcast %cst_19 : f32 to vector<8x128xf32>
    %43 = arith.subf %42, %36 : vector<8x128xf32>
    %44 = arith.mulf %43, %41 : vector<8x128xf32>
    %45 = arith.mulf %36, %8 : vector<8x128xf32>
    %46 = arith.addf %44, %45 : vector<8x128xf32>
    %47 = arith.truncf %46 : vector<8x128xf32> to vector<8x128xbf16>
    %c0_20 = arith.constant 0 : index
    %c0_21 = arith.constant 0 : index
    %48 = vector.load %arg9[%c0_20, %c0_21] : memref<128x128xbf16, #tpu.memory_space<vmem>>, vector<128x128xbf16>
    %cst_22 = arith.constant dense<0.000000e+00> : vector<8x128xf32>
    %49 = tpu.matmul %47, %48, %cst_22 {dimension_numbers = #tpu.dot_dimension_numbers<[1], [0], [0], [1], [0, 0, 1, 1], [], []>} : vector<8x128xbf16>, vector<128x128xbf16>, vector<8x128xf32> -> vector<8x128xf32>
    %c0_23 = arith.constant 0 : index
    %c0_24 = arith.constant 0 : index
    %50 = vector.load %arg10[%c0_23, %c0_24] : memref<1x128xf32, #tpu.memory_space<vmem>>, vector<1x128xf32>
    %51 = vector.broadcast %50 : vector<1x128xf32> to vector<8x128xf32>
    %52 = arith.addf %49, %51 : vector<8x128xf32>
    %c0_25 = arith.constant 0 : index
    %c0_26 = arith.constant 0 : index
    %53 = vector.load %arg11[%c0_25, %c0_26] : memref<8x128xf32, #tpu.memory_space<vmem>>, vector<8x128xf32>
    tpu.vector_store %arg11[%c0_25, %c0_26], %52 {strides = array<i32>} : memref<8x128xf32, #tpu.memory_space<vmem>>, vector<8x128xf32>,
    %c0_27 = arith.constant 0 : index
    %c0_28 = arith.constant 0 : index
    %54 = vector.load %arg12[%c0_27, %c0_28] : memref<8x128xf32, #tpu.memory_space<vmem>>, vector<8x128xf32>
    tpu.vector_store %arg12[%c0_27, %c0_28], %46 {strides = array<i32>} : memref<8x128xf32, #tpu.memory_space<vmem>>, vector<8x128xf32>,
    return
  }
  func.func @transform_0(%arg0: i32) -> (i32, i32) {
    %c0_i32 = arith.constant 0 : i32
    %c0_i32_0 = arith.constant 0 : i32
    return %arg0, %c0_i32 : i32, i32
  }
  func.func @transform_1(%arg0: i32) -> (i32, i32) {
    %c0_i32 = arith.constant 0 : i32
    %c0_i32_0 = arith.constant 0 : i32
    return %arg0, %c0_i32 : i32, i32
  }
  func.func @transform_2(%arg0: i32) -> (i32, i32) {
    %c0_i32 = arith.constant 0 : i32
    %c0_i32_0 = arith.constant 0 : i32
    %c0_i32_1 = arith.constant 0 : i32
    return %c0_i32, %c0_i32_0 : i32, i32
  }
  func.func @transform_3(%arg0: i32) -> (i32, i32) {
    %c0_i32 = arith.constant 0 : i32
    %c0_i32_0 = arith.constant 0 : i32
    %c0_i32_1 = arith.constant 0 : i32
    return %c0_i32, %c0_i32_0 : i32, i32
  }
  func.func @transform_4(%arg0: i32) -> (i32, i32) {
    %c0_i32 = arith.constant 0 : i32
    %c0_i32_0 = arith.constant 0 : i32
    %c0_i32_1 = arith.constant 0 : i32
    return %c0_i32, %c0_i32_0 : i32, i32
  }
  func.func @transform_5(%arg0: i32) -> (i32, i32) {
    %c0_i32 = arith.constant 0 : i32
    %c0_i32_0 = arith.constant 0 : i32
    %c0_i32_1 = arith.constant 0 : i32
    return %c0_i32, %c0_i32_0 : i32, i32
  }
  func.func @transform_6(%arg0: i32) -> (i32, i32) {
    %c0_i32 = arith.constant 0 : i32
    %c0_i32_0 = arith.constant 0 : i32
    %c0_i32_1 = arith.constant 0 : i32
    return %c0_i32, %c0_i32_0 : i32, i32
  }
  func.func @transform_7(%arg0: i32) -> (i32, i32) {
    %c0_i32 = arith.constant 0 : i32
    %c0_i32_0 = arith.constant 0 : i32
    %c0_i32_1 = arith.constant 0 : i32
    return %c0_i32, %c0_i32_0 : i32, i32
  }
  func.func @transform_8(%arg0: i32) -> (i32, i32) {
    %c0_i32 = arith.constant 0 : i32
    %c0_i32_0 = arith.constant 0 : i32
    %c0_i32_1 = arith.constant 0 : i32
    return %c0_i32, %c0_i32_0 : i32, i32
  }
  func.func @transform_9(%arg0: i32) -> (i32, i32) {
    %c0_i32 = arith.constant 0 : i32
    %c0_i32_0 = arith.constant 0 : i32
    %c0_i32_1 = arith.constant 0 : i32
    return %c0_i32, %c0_i32_0 : i32, i32
  }
  func.func @transform_10(%arg0: i32) -> (i32, i32) {
    %c0_i32 = arith.constant 0 : i32
    %c0_i32_0 = arith.constant 0 : i32
    return %arg0, %c0_i32 : i32, i32
  }
  func.func @transform_11(%arg0: i32) -> (i32, i32) {
    %c0_i32 = arith.constant 0 : i32
    %c0_i32_0 = arith.constant 0 : i32
    return %arg0, %c0_i32 : i32, i32
  }
}

module attributes {stable_mosaic.version = 11 : i64} {
  func.func @rnn_step_kernel(%arg0: i32, %arg1: memref<8x32xf32, #tpu.memory_space<vmem>>, %arg2: memref<8x128xf32, #tpu.memory_space<vmem>>, %arg3: memref<32x128xbf16, #tpu.memory_space<vmem>>, %arg4: memref<1x128xf32, #tpu.memory_space<vmem>>, %arg5: memref<128x384xbf16, #tpu.memory_space<vmem>>, %arg6: memref<128x384xbf16, #tpu.memory_space<vmem>>, %arg7: memref<1x384xf32, #tpu.memory_space<vmem>>, %arg8: memref<1x384xf32, #tpu.memory_space<vmem>>, %arg9: memref<128x128xbf16, #tpu.memory_space<vmem>>, %arg10: memref<1x128xf32, #tpu.memory_space<vmem>>, %arg11: memref<8x128xf32, #tpu.memory_space<vmem>>, %arg12: memref<8x128xf32, #tpu.memory_space<vmem>>) attributes {dimension_semantics = [#tpu.dimension_semantics<parallel>], iteration_bounds = array<i64: 1>, scalar_prefetch = 0 : i64, scratch_operands = 0 : i64, tpu.core_type = #tpu.core_type<tc>, window_params = [{transform_indices = @transform_0, window_bounds = array<i64: 8, 32>}, {transform_indices = @transform_1, window_bounds = array<i64: 8, 128>}, {pipeline_mode = #tpu.pipeline_mode<synchronous>, transform_indices = @transform_2, window_bounds = array<i64: 32, 128>}, {pipeline_mode = #tpu.pipeline_mode<synchronous>, transform_indices = @transform_3, window_bounds = array<i64: 1, 128>}, {pipeline_mode = #tpu.pipeline_mode<synchronous>, transform_indices = @transform_4, window_bounds = array<i64: 128, 384>}, {pipeline_mode = #tpu.pipeline_mode<synchronous>, transform_indices = @transform_5, window_bounds = array<i64: 128, 384>}, {pipeline_mode = #tpu.pipeline_mode<synchronous>, transform_indices = @transform_6, window_bounds = array<i64: 1, 384>}, {pipeline_mode = #tpu.pipeline_mode<synchronous>, transform_indices = @transform_7, window_bounds = array<i64: 1, 384>}, {pipeline_mode = #tpu.pipeline_mode<synchronous>, transform_indices = @transform_8, window_bounds = array<i64: 128, 128>}, {pipeline_mode = #tpu.pipeline_mode<synchronous>, transform_indices = @transform_9, window_bounds = array<i64: 1, 128>}, {transform_indices = @transform_10, window_bounds = array<i64: 8, 128>}, {transform_indices = @transform_11, window_bounds = array<i64: 8, 128>}]} {
    %c0 = arith.constant 0 : index
    %c0_0 = arith.constant 0 : index
    %0 = vector.load %arg1[%c0, %c0_0] : memref<8x32xf32, #tpu.memory_space<vmem>>, vector<8x32xf32>
    %1 = arith.truncf %0 : vector<8x32xf32> to vector<8x32xbf16>
    %c0_1 = arith.constant 0 : index
    %c0_2 = arith.constant 0 : index
    %2 = vector.load %arg3[%c0_1, %c0_2] : memref<32x128xbf16, #tpu.memory_space<vmem>>, vector<32x128xbf16>
    %cst = arith.constant dense<0.000000e+00> : vector<8x128xf32>
    %3 = tpu.matmul %1, %2, %cst {dimension_numbers = #tpu.dot_dimension_numbers<[1], [0], [0], [1], [0, 0, 1, 1], [], []>} : vector<8x32xbf16>, vector<32x128xbf16>, vector<8x128xf32> -> vector<8x128xf32>
    %c0_3 = arith.constant 0 : index
    %c0_4 = arith.constant 0 : index
    %4 = vector.load %arg4[%c0_3, %c0_4] : memref<1x128xf32, #tpu.memory_space<vmem>>, vector<1x128xf32>
    %5 = vector.broadcast %4 : vector<1x128xf32> to vector<8x128xf32>
    %6 = arith.addf %3, %5 : vector<8x128xf32>
    %7 = math.tanh %6 : vector<8x128xf32>
    %c0_5 = arith.constant 0 : index
    %c0_6 = arith.constant 0 : index
    %8 = vector.load %arg2[%c0_5, %c0_6] : memref<8x128xf32, #tpu.memory_space<vmem>>, vector<8x128xf32>
    %9 = arith.truncf %7 : vector<8x128xf32> to vector<8x128xbf16>
    %c0_7 = arith.constant 0 : index
    %c0_8 = arith.constant 0 : index
    %10 = vector.load %arg5[%c0_7, %c0_8] : memref<128x384xbf16, #tpu.memory_space<vmem>>, vector<128x384xbf16>
    %cst_9 = arith.constant dense<0.000000e+00> : vector<8x384xf32>
    %11 = tpu.matmul %9, %10, %cst_9 {dimension_numbers = #tpu.dot_dimension_numbers<[1], [0], [0], [1], [0, 0, 1, 1], [], []>} : vector<8x128xbf16>, vector<128x384xbf16>, vector<8x384xf32> -> vector<8x384xf32>
    %c0_10 = arith.constant 0 : index
    %c0_11 = arith.constant 0 : index
    %12 = vector.load %arg7[%c0_10, %c0_11] : memref<1x384xf32, #tpu.memory_space<vmem>>, vector<1x384xf32>
    %13 = vector.broadcast %12 : vector<1x384xf32> to vector<8x384xf32>
    %14 = arith.addf %11, %13 : vector<8x384xf32>
    %15 = arith.truncf %8 : vector<8x128xf32> to vector<8x128xbf16>
    %c0_12 = arith.constant 0 : index
    %c0_13 = arith.constant 0 : index
    %16 = vector.load %arg6[%c0_12, %c0_13] : memref<128x384xbf16, #tpu.memory_space<vmem>>, vector<128x384xbf16>
    %cst_14 = arith.constant dense<0.000000e+00> : vector<8x384xf32>
    %17 = tpu.matmul %15, %16, %cst_14 {dimension_numbers = #tpu.dot_dimension_numbers<[1], [0], [0], [1], [0, 0, 1, 1], [], []>} : vector<8x128xbf16>, vector<128x384xbf16>, vector<8x384xf32> -> vector<8x384xf32>
    %c0_15 = arith.constant 0 : index
    %c0_16 = arith.constant 0 : index
    %18 = vector.load %arg8[%c0_15, %c0_16] : memref<1x384xf32, #tpu.memory_space<vmem>>, vector<1x384xf32>
    %19 = vector.broadcast %18 : vector<1x384xf32> to vector<8x384xf32>
    %20 = arith.addf %17, %19 : vector<8x384xf32>
    %21 = vector.extract_strided_slice %14 {offsets = [0, 0], sizes = [8, 128], strides = [1, 1]} : vector<8x384xf32> to vector<8x128xf32>
    %22 = vector.extract_strided_slice %20 {offsets = [0, 0], sizes = [8, 128], strides = [1, 1]} : vector<8x384xf32> to vector<8x128xf32>
    %23 = arith.addf %21, %22 : vector<8x128xf32>
    %24 = arith.negf %23 : vector<8x128xf32>
    %25 = math.exp %24 : vector<8x128xf32>
    %cst_17 = arith.constant 1.000000e+00 : f32
    %26 = vector.broadcast %cst_17 : f32 to vector<8x128xf32>
    %27 = arith.addf %26, %25 : vector<8x128xf32>
    %28 = arith.divf %26, %27 : vector<8x128xf32>
    %29 = vector.extract_strided_slice %14 {offsets = [0, 128], sizes = [8, 128], strides = [1, 1]} : vector<8x384xf32> to vector<8x128xf32>
    %30 = vector.extract_strided_slice %20 {offsets = [0, 128], sizes = [8, 128], strides = [1, 1]} : vector<8x384xf32> to vector<8x128xf32>
    %31 = arith.addf %29, %30 : vector<8x128xf32>
    %32 = arith.negf %31 : vector<8x128xf32>
    %33 = math.exp %32 : vector<8x128xf32>
    %cst_18 = arith.constant 1.000000e+00 : f32
    %34 = vector.broadcast %cst_18 : f32 to vector<8x128xf32>
    %35 = arith.addf %34, %33 : vector<8x128xf32>
    %36 = arith.divf %34, %35 : vector<8x128xf32>
    %37 = vector.extract_strided_slice %14 {offsets = [0, 256], sizes = [8, 128], strides = [1, 1]} : vector<8x384xf32> to vector<8x128xf32>
    %38 = vector.extract_strided_slice %20 {offsets = [0, 256], sizes = [8, 128], strides = [1, 1]} : vector<8x384xf32> to vector<8x128xf32>
    %39 = arith.mulf %28, %38 : vector<8x128xf32>
    %40 = arith.addf %37, %39 : vector<8x128xf32>
    %41 = math.tanh %40 : vector<8x128xf32>
    %cst_19 = arith.constant 1.000000e+00 : f32
    %42 = vector.broadcast %cst_19 : f32 to vector<8x128xf32>
    %43 = arith.subf %42, %36 : vector<8x128xf32>
    %44 = arith.mulf %43, %41 : vector<8x128xf32>
    %45 = arith.mulf %36, %8 : vector<8x128xf32>
    %46 = arith.addf %44, %45 : vector<8x128xf32>
    %47 = arith.truncf %46 : vector<8x128xf32> to vector<8x128xbf16>
    %c0_20 = arith.constant 0 : index
    %c0_21 = arith.constant 0 : index
    %48 = vector.load %arg9[%c0_20, %c0_21] : memref<128x128xbf16, #tpu.memory_space<vmem>>, vector<128x128xbf16>
    %cst_22 = arith.constant dense<0.000000e+00> : vector<8x128xf32>
    %49 = tpu.matmul %47, %48, %cst_22 {dimension_numbers = #tpu.dot_dimension_numbers<[1], [0], [0], [1], [0, 0, 1, 1], [], []>} : vector<8x128xbf16>, vector<128x128xbf16>, vector<8x128xf32> -> vector<8x128xf32>
    %c0_23 = arith.constant 0 : index
    %c0_24 = arith.constant 0 : index
    %50 = vector.load %arg10[%c0_23, %c0_24] : memref<1x128xf32, #tpu.memory_space<vmem>>, vector<1x128xf32>
    %51 = vector.broadcast %50 : vector<1x128xf32> to vector<8x128xf32>
    %52 = arith.addf %49, %51 : vector<8x128xf32>
    %c0_25 = arith.constant 0 : index
    %c0_26 = arith.constant 0 : index
    %53 = vector.load %arg11[%c0_25, %c0_26] : memref<8x128xf32, #tpu.memory_space<vmem>>, vector<8x128xf32>
    tpu.vector_store %arg11[%c0_25, %c0_26], %52 {strides = array<i32>} : memref<8x128xf32, #tpu.memory_space<vmem>>, vector<8x128xf32>,
    %c0_27 = arith.constant 0 : index
    %c0_28 = arith.constant 0 : index
    %54 = vector.load %arg12[%c0_27, %c0_28] : memref<8x128xf32, #tpu.memory_space<vmem>>, vector<8x128xf32>
    tpu.vector_store %arg12[%c0_27, %c0_28], %46 {strides = array<i32>} : memref<8x128xf32, #tpu.memory_space<vmem>>, vector<8x128xf32>,
    return
  }
  func.func @transform_0(%arg0: i32) -> (i32, i32) {
    %c0_i32 = arith.constant 0 : i32
    %c0_i32_0 = arith.constant 0 : i32
    return %arg0, %c0_i32 : i32, i32
  }
  func.func @transform_1(%arg0: i32) -> (i32, i32) {
    %c0_i32 = arith.constant 0 : i32
    %c0_i32_0 = arith.constant 0 : i32
    return %arg0, %c0_i32 : i32, i32
  }
  func.func @transform_2(%arg0: i32) -> (i32, i32) {
    %c0_i32 = arith.constant 0 : i32
    %c0_i32_0 = arith.constant 0 : i32
    %c0_i32_1 = arith.constant 0 : i32
    return %c0_i32, %c0_i32_0 : i32, i32
  }
  func.func @transform_3(%arg0: i32) -> (i32, i32) {
    %c0_i32 = arith.constant 0 : i32
    %c0_i32_0 = arith.constant 0 : i32
    %c0_i32_1 = arith.constant 0 : i32
    return %c0_i32, %c0_i32_0 : i32, i32
  }
  func.func @transform_4(%arg0: i32) -> (i32, i32) {
    %c0_i32 = arith.constant 0 : i32
    %c0_i32_0 = arith.constant 0 : i32
    %c0_i32_1 = arith.constant 0 : i32
    return %c0_i32, %c0_i32_0 : i32, i32
  }
  func.func @transform_5(%arg0: i32) -> (i32, i32) {
    %c0_i32 = arith.constant 0 : i32
    %c0_i32_0 = arith.constant 0 : i32
    %c0_i32_1 = arith.constant 0 : i32
    return %c0_i32, %c0_i32_0 : i32, i32
  }
  func.func @transform_6(%arg0: i32) -> (i32, i32) {
    %c0_i32 = arith.constant 0 : i32
    %c0_i32_0 = arith.constant 0 : i32
    %c0_i32_1 = arith.constant 0 : i32
    return %c0_i32, %c0_i32_0 : i32, i32
  }
  func.func @transform_7(%arg0: i32) -> (i32, i32) {
    %c0_i32 = arith.constant 0 : i32
    %c0_i32_0 = arith.constant 0 : i32
    %c0_i32_1 = arith.constant 0 : i32
    return %c0_i32, %c0_i32_0 : i32, i32
  }
  func.func @transform_8(%arg0: i32) -> (i32, i32) {
    %c0_i32 = arith.constant 0 : i32
    %c0_i32_0 = arith.constant 0 : i32
    %c0_i32_1 = arith.constant 0 : i32
    return %c0_i32, %c0_i32_0 : i32, i32
  }
  func.func @transform_9(%arg0: i32) -> (i32, i32) {
    %c0_i32 = arith.constant 0 : i32
    %c0_i32_0 = arith.constant 0 : i32
    %c0_i32_1 = arith.constant 0 : i32
    return %c0_i32, %c0_i32_0 : i32, i32
  }
  func.func @transform_10(%arg0: i32) -> (i32, i32) {
    %c0_i32 = arith.constant 0 : i32
    %c0_i32_0 = arith.constant 0 : i32
    return %arg0, %c0_i32 : i32, i32
  }
  func.func @transform_11(%arg0: i32) -> (i32, i32) {
    %c0_i32 = arith.constant 0 : i32
    %c0_i32_0 = arith.constant 0 : i32
    return %arg0, %c0_i32 : i32, i32
  }
}

</mosaic_0001>

<bundles_post_ra>
// kernel: tpu_custom_call.1
= control target key start
LH: loop header
LB: loop body
LE: loop exit
PB: predicated region body
PF: predicated region fallthrough
CT: control target
= control target key end

     0   :  { %17 = vsyncpa [#allocation3], 0  ;;  %s1464_s0 = inlined_call_operand.hbm [shape: f32[8,32], index: 0, kind: input, shape index: {}]   ;;  %s1465_s1 = inlined_call_operand.hbm [shape: f32[8,128], index: 1, kind: input, shape index: {}]   ;;  %s1466_s2 = inlined_call_operand.hbm [shape: bf16[32,128], index: 2, kind: input, shape index: {}]   ;;  %s1467_s3 = inlined_call_operand.vmem [shape: f32[1,128], index: 3, kind: input, shape index: {}]   ;;  %s1468_s4 = inlined_call_operand.hbm [shape: bf16[128,384], index: 4, kind: input, shape index: {}]   ;;  %s1469_s5 = inlined_call_operand.hbm [shape: bf16[128,384], index: 5, kind: input, shape index: {}]   ;;  %s1470_s6 = inlined_call_operand.vmem [shape: f32[1,384], index: 6, kind: input, shape index: {}]   ;;  %s1471_s7 = inlined_call_operand.vmem [shape: f32[1,384], index: 7, kind: input, shape index: {}]   ;;  %s1472_s8 = inlined_call_operand.hbm [shape: bf16[128,128], index: 8, kind: input, shape index: {}]   ;;  %s1473_s9 = inlined_call_operand.vmem [shape: f32[1,128], index: 9, kind: input, shape index: {}]   ;;  %s1474_s10 = inlined_call_operand.hbm [shape: f32[8,128], index: 10, kind: output, shape index: {0}]   ;;  %s1475_s11 = inlined_call_operand.hbm [shape: f32[8,128], index: 11, kind: output, shape index: {1}]  }
   0x1   :  { %18 = vsyncpa [#allocation6], 0 }
   0x2   :  { %19 = vsyncpa [#allocation9], 0 }
   0x3   :  { %20 = vsyncpa [#allocation12], 0 }
   0x4   :  { %21 = vsyncpa [#allocation4], 0 }
   0x5   :  { %22 = vsyncpa [#allocation15], 0  ;;  %s1308_s17 = smov [#allocation5]   ;;  %s1309_s19 = smov [#allocation8]  }
   0x6   :  { %s39_s18 = sshll.u32 %s1308_s17, 4  ;;  %s62_s20 = sshll.u32 %s1309_s19, 4  ;;  %s40_s18 = int_to_ptr.vmem [resolvable:$true] %s39_s18  ;;  %s63_s20 = int_to_ptr.vmem [resolvable:$true] %s62_s20 }
   0x7   :  { %s1144_s21 = scalar_lea.vmem %s40_s18, 128  ;;  %p1149_p1 = scmp.lt.s32.totalorder %s40_s18, %s40_s18 }
   0x8   :  { %p1145_p0 = scmp.ne.s32.totalorder %s40_s18, %s1144_s21  ;;  %p1150_p2 = scmp.lt.s32.totalorder %s1144_s21, %s1144_s21 }
   0xa   :  { %p1151_p3 = por %p1150_p2, %p1149_p1 }
   0xc   :  { %p1152_p4 = pnand %p1151_p3, %p1145_p0 }
   0xe   :  { %1155 = shalt.err (!%p1152_p4)
}
   0xf   :  { %42 = dma.hbm_to_vmem [thread:$0]  %s1465_s1, 128, %s40_s18, [#allocation6]  }
  0x10   :  { %s1164_s24 = scalar_lea.vmem %s63_s20, 3072  ;;  %p1169_p6 = scmp.lt.s32.totalorder %s63_s20, %s63_s20 }
  0x11   :  { %p1165_p5 = scmp.ne.s32.totalorder %s63_s20, %s1164_s24  ;;  %p1170_p7 = scmp.lt.s32.totalorder %s1164_s24, %s1164_s24 }
  0x13   :  { %p1171_p8 = por %p1170_p7, %p1169_p6 }
  0x15   :  { %p1172_p9 = pnand %p1171_p8, %p1165_p5 }
  0x17   :  { %1175 = shalt.err (!%p1172_p9)
}
  0x18   :  { %s1310_s25 = smov 192   ;;  %s1311_s26 = smov 12  }
  0x19   :  { %68 = dma.hbm_to_vmem [thread:$0]  %s1468_s4, 3072, %s63_s20, [#allocation9], %s1310_s25, %s1310_s25, %s1311_s26  }
  0x1a   :  { %s1312_s29 = smov [#allocation2]   ;;  %s1313_s12 = smov [#allocation7]  }
  0x1b   :  { %s29_s30 = sshll.u32 %s1312_s29, 4  ;;  %s48_s1 = sshll.u32 %s1313_s12, 4  ;;  %s30_s30 = int_to_ptr.vmem [resolvable:$true] %s29_s30  ;;  %s49_s1 = int_to_ptr.vmem [resolvable:$true] %s48_s1 }
  0x1c   :  { %s1184_s13 = scalar_lea.vmem %s30_s30, 128  ;;  %p1189_p11 = scmp.lt.s32.totalorder %s30_s30, %s30_s30 }
  0x1d   :  { %p1185_p10 = scmp.ne.s32.totalorder %s30_s30, %s1184_s13  ;;  %p1190_p12 = scmp.lt.s32.totalorder %s1184_s13, %s1184_s13 }
  0x1f   :  { %p1191_p13 = por %p1190_p12, %p1189_p11 }
  0x21   :  { %p1192_p0 = pnand %p1191_p13, %p1185_p10 }
  0x23   :  { %1195 = shalt.err (!%p1192_p0)
}
  0x24   :  { %32 = dma.hbm_to_vmem [thread:$0]  %s1464_s0, 128, %s30_s30, [#allocation3]  }
  0x25   :  { %s1204_s16 = scalar_lea.vmem %s49_s1, 256  ;;  %p1209_p2 = scmp.lt.s32.totalorder %s49_s1, %s49_s1 }
  0x26   :  { %p1205_p1 = scmp.ne.s32.totalorder %s49_s1, %s1204_s16  ;;  %p1210_p3 = scmp.lt.s32.totalorder %s1204_s16, %s1204_s16 }
  0x28   :  { %p1211_p4 = por %p1210_p3, %p1209_p2 }
  0x2a   :  { %p1212_p5 = pnand %p1211_p4, %p1205_p1 }
  0x2c   :  { %1215 = shalt.err (!%p1212_p5)
}
  0x2d   :  { %s1314_s4 = smov 64   ;;  %s1315_s17 = smov 4  }
  0x2e   :  { %54 = dma.hbm_to_vmem [thread:$0]  %s1466_s2, 256, %s49_s1, [#allocation6], %s1314_s4, %s1314_s4, %s1315_s17  }
  0x2f   :  { %s1316_s20 = smov [#allocation10]   ;;  %s1317_s22 = smov [#allocation11]  }
  0x30   :  { %s74_s21 = sshll.u32 %s1316_s20, 4  ;;  %s90_s23 = sshll.u32 %s1317_s22, 4  ;;  %s75_s21 = int_to_ptr.vmem [resolvable:$true] %s74_s21  ;;  %s91_s23 = int_to_ptr.vmem [resolvable:$true] %s90_s23 }
  0x31   :  { %s1224_s0 = scalar_lea.vmem %s75_s21, 3072  ;;  %p1229_p7 = scmp.lt.s32.totalorder %s75_s21, %s75_s21 }
  0x32   :  { %p1225_p6 = scmp.ne.s32.totalorder %s75_s21, %s1224_s0  ;;  %p1230_p8 = scmp.lt.s32.totalorder %s1224_s0, %s1224_s0 }
  0x34   :  { %p1231_p9 = por %p1230_p8, %p1229_p7 }
  0x36   :  { %p1232_p10 = pnand %p1231_p9, %p1225_p6 }
  0x38   :  { %1235 = shalt.err (!%p1232_p10)
}
  0x39   :  { %80 = dma.hbm_to_vmem [thread:$0]  %s1469_s5, 3072, %s75_s21, [#allocation9], %s1310_s25, %s1310_s25, %s1311_s26  }
  0x3a   :  { %s1244_s2 = scalar_lea.vmem %s91_s23, 1024  ;;  %p1249_p12 = scmp.lt.s32.totalorder %s91_s23, %s91_s23 }
  0x3b   :  { %p1245_p11 = scmp.ne.s32.totalorder %s91_s23, %s1244_s2  ;;  %p1250_p13 = scmp.lt.s32.totalorder %s1244_s2, %s1244_s2 }
  0x3d   :  { %p1251_p0 = por %p1250_p13, %p1249_p12 }
  0x3f   :  { %p1252_p1 = pnand %p1251_p0, %p1245_p11 }
  0x41   :  { %1255 = shalt.err (!%p1252_p1)
}
  0x42   :  { %96 = dma.hbm_to_vmem [thread:$0]  %s1472_s8, 1024, %s91_s23, [#allocation12], %s1314_s4, %s1314_s4, %s1315_s17  }
  0x43   :  { %1296 = dma.done.wait [#allocation3], 128  }
  0x44   :  { %1297 = vsyncadd [#allocation3], 4294967168 }
  0x45   :  { %1298 = dma.done.wait [#allocation6], 384  }
  0x46   :  { %1299 = vsyncadd [#allocation6], 4294966912 }
  0x47   :  { %1300 = dma.done.wait [#allocation9], 6144  }
  0x48   :  { %1301 = vsyncadd [#allocation9], 4294961152 }
  0x49   :  { %1302 = dma.done.wait [#allocation12], 1024  }
  0x4a   :  { %1303 = vsyncadd [#allocation12], 4294966272  ;;  %v1318_v0 = vmov 0.0   ;;  %vm1319_vm0 = vmmov 0   ;;  %v1050_v1 = vld [vmem:[#allocation7 + $0x8] sm:$0xff]   ;;  %v1051_v2 = vld [vmem:[#allocation7] sm:$0xff]  }
  0x4b   :  { %967 = vmatprep.subr.bf16.mxu0 %v1318_v0  ;;  %971 = vmatprep.mubr.msk.bf16.mxu0 %vm1319_vm0, %v1318_v0  ;;  %v118_v3 = vld [vmem:[#allocation2] sm:$0xff]  ;;  %v1052_v4 = vld [vmem:[#allocation8 + $0xac] ss:$12 sps:$4 sm:$0xff]   ;;  %v1054_v5 = vld [vmem:[#allocation8 + $0xa8] ss:$12 sps:$4 sm:$0xff]   ;;  %vm143_vm1 = vcmask 261120  }
  0x4c   :  { %968 = vmatpush3.bf16.msra.mxu0 %v1050_v1  ;;  %v119_v6 = vpack.c.bf16 %v118_v3, %v118_v3  ;;  %367 = vmatprep.subr.bf16.mxu1 %v1052_v4  ;;  %v1055_v7 = vld [vmem:[#allocation8 + $0xb0] ss:$12 sps:$4 sm:$0xff]   ;;  %v1056_v8 = vld [vmem:[#allocation8 + $0x94] ss:$12 sps:$4 sm:$0xff]   ;;  %v1059_v11 = vld [vmem:[#allocation8 + $0x98] ss:$12 sps:$4 sm:$0xff]  }
  0x4d   :  { %969 = vmatprep.subr.bf16.mxu0 %v1318_v0  ;;  %368 = vmatpush1.bf16.msra.mxu1 %v1054_v5  ;;  %v1058_v9 = vld [vmem:[#allocation8 + $0x90] ss:$12 sps:$4 sm:$0xff]   ;;  %v1062_v12 = vld [vmem:[#allocation8 + $0x78] ss:$12 sps:$4 sm:$0xff]   ;;  %v1063_v14 = vld [vmem:[#allocation8 + $0x80] ss:$12 sps:$4 sm:$0xff]  }
  0x4e   :  { %369 = vmatprep.subr.bf16.mxu1 %v1056_v8  ;;  %v1060_v10 = vld [vmem:[#allocation8 + $0x7c] ss:$12 sps:$4 sm:$0xff]   ;;  %v1064_v13 = vld [vmem:[#allocation8 + $0x64] ss:$12 sps:$4 sm:$0xff]   ;;  %v1066_v15 = vld [vmem:[#allocation8 + $0x60] ss:$12 sps:$4 sm:$0xff]  }
  0x4f   :  { %v1067_v16 = vld [vmem:[#allocation8 + $0x68] ss:$12 sps:$4 sm:$0xff]   ;;  %v1068_v17 = vld [vmem:[#allocation8 + $0x4c] ss:$12 sps:$4 sm:$0xff]   ;;  %v1071_v19 = vld [vmem:[#allocation8 + $0x50] ss:$12 sps:$4 sm:$0xff]  }
  0x50   :  { %970 = vmatpush3.bf16.msra.mxu0 %v1051_v2  ;;  %v1070_v18 = vld [vmem:[#allocation8 + $0x48] ss:$12 sps:$4 sm:$0xff]   ;;  %v1074_v21 = vld [vmem:[#allocation8 + $0x30] ss:$12 sps:$4 sm:$0xff]   ;;  %v1075_v22 = vld [vmem:[#allocation8 + $0x38] ss:$12 sps:$4 sm:$0xff]  }
  0x51   :  { %975 = vmatprep.subr.bf16.mxu0 %v1318_v0  ;;  %370 = vmatpush1.bf16.msra.mxu1 %v1058_v9  ;;  %v1072_v20 = vld [vmem:[#allocation8 + $0x34] ss:$12 sps:$4 sm:$0xff]   ;;  %v1076_v23 = vld [vmem:[#allocation8 + $0x1c] ss:$12 sps:$4 sm:$0xff]   ;;  %v1078_v24 = vld [vmem:[#allocation8 + $0x18] ss:$12 sps:$4 sm:$0xff]  }
  0x52   :  { %371 = vmatprep.subr.bf16.mxu1 %v1060_v10  ;;  %v1079_v25 = vld [vmem:[#allocation8 + $0x20] ss:$12 sps:$4 sm:$0xff]   ;;  %v1080_v26 = vld [vmem:[#allocation8 + $0x4] ss:$12 sps:$4 sm:$0xff]   ;;  %v1320_v27 = vmov 0   ;;  %v1116_v1 = vld [vmem:[#allocation11 + $0x38] sm:$0xff]  }
  0x53   :  { %972 = vmatmul.mubr.msk.bf16.vlgmr.msra.gmra.mxu0 %vm143_vm1, %v119_v6  ;;  %399 = vmatprep.mubr.bf16.mxu1 %v1320_v27  ;;  %v1082_v28 = vld [vmem:[#allocation8] ss:$12 sps:$4 sm:$0xff]   ;;  %v1083_v29 = vld [vmem:[#allocation8 + $0x8] ss:$12 sps:$4 sm:$0xff]   ;;  %v1108_v39 = vld [vmem:[#allocation10 + $0xb0] ss:$12 sps:$4 sm:$0xff]  }
  0x54   :  { %976 = vmatpush3.bf16.msra.mxu0 %v1055_v7  ;;  %991 = vmatprep.mubr.msk.bf16.mxu0 %vm1319_vm0, %v1318_v0  ;;  %v1086_v30 = vld [vmem:[#allocation10 + $0xac] ss:$12 sps:$4 sm:$0xff]   ;;  %v874_v31 = vld [vmem:[%s1467_s3] ss:$0 sm:$0xff]  ;;  %v1084_v38 = vld [vmem:[#allocation10 + $0xa8] ss:$12 sps:$4 sm:$0xff]  }
  0x55   :  { %977 = vmatprep.subr.bf16.mxu0 %v1318_v0  ;;  %372 = vmatpush1.bf16.msra.mxu1 %v1062_v12  ;;  %v1089_v41 = vld [vmem:[#allocation10 + $0x94] ss:$12 sps:$4 sm:$0xff]   ;;  %v1087_v42 = vld [vmem:[#allocation10 + $0x90] ss:$12 sps:$4 sm:$0xff]   ;;  %v1109_v43 = vld [vmem:[#allocation10 + $0x98] ss:$12 sps:$4 sm:$0xff]  }
  0x56   :  { %373 = vmatprep.subr.bf16.mxu1 %v1064_v13  ;;  %v1092_v44 = vld [vmem:[#allocation10 + $0x7c] ss:$12 sps:$4 sm:$0xff]   ;;  %v1090_v45 = vld [vmem:[#allocation10 + $0x78] ss:$12 sps:$4 sm:$0xff]   ;;  %v1110_v46 = vld [vmem:[#allocation10 + $0x80] ss:$12 sps:$4 sm:$0xff]  }
  0x57   :  { %v1095_v47 = vld [vmem:[#allocation10 + $0x64] ss:$12 sps:$4 sm:$0xff]   ;;  %v1093_v48 = vld [vmem:[#allocation10 + $0x60] ss:$12 sps:$4 sm:$0xff]   ;;  %v1111_v49 = vld [vmem:[#allocation10 + $0x68] ss:$12 sps:$4 sm:$0xff]  }
  0x58   :  { %978 = vmatpush3.bf16.msra.mxu0 %v1059_v11  ;;  %v1098_v50 = vld [vmem:[#allocation10 + $0x4c] ss:$12 sps:$4 sm:$0xff]   ;;  %v1096_v51 = vld [vmem:[#allocation10 + $0x48] ss:$12 sps:$4 sm:$0xff]   ;;  %v1112_v52 = vld [vmem:[#allocation10 + $0x50] ss:$12 sps:$4 sm:$0xff]  }
  0x59   :  { %979 = vmatprep.subr.bf16.mxu0 %v1318_v0  ;;  %374 = vmatpush1.bf16.msra.mxu1 %v1066_v15  ;;  %v1101_v53 = vld [vmem:[#allocation10 + $0x34] ss:$12 sps:$4 sm:$0xff]   ;;  %v1099_v54 = vld [vmem:[#allocation10 + $0x30] ss:$12 sps:$4 sm:$0xff]   ;;  %v1113_v55 = vld [vmem:[#allocation10 + $0x38] ss:$12 sps:$4 sm:$0xff]  }
  0x5a   :  { %375 = vmatprep.subr.bf16.mxu1 %v1068_v17  ;;  %v1104_v56 = vld [vmem:[#allocation10 + $0x1c] ss:$12 sps:$4 sm:$0xff]   ;;  %v1102_v57 = vld [vmem:[#allocation10 + $0x18] ss:$12 sps:$4 sm:$0xff]   ;;  %v1114_v58 = vld [vmem:[#allocation10 + $0x20] ss:$12 sps:$4 sm:$0xff]   ;;  %v224_v17 = vlaneseq }
  0x5b   :  { %v1107_v59 = vld [vmem:[#allocation10 + $0x4] ss:$12 sps:$4 sm:$0xff]   ;;  %v1105_v60 = vld [vmem:[#allocation10] ss:$12 sps:$4 sm:$0xff]   ;;  %v1115_v62 = vld [vmem:[#allocation10 + $0x8] ss:$12 sps:$4 sm:$0xff]  }
  0x5c   :  { %980 = vmatpush3.bf16.msra.mxu0 %v1063_v14  ;;  %v1433_v61 = vld [vmem:[#allocation5] sm:$0xff]  ;;  %v1117_v2 = vld [vmem:[#allocation11 + $0x30] sm:$0xff]   ;;  %v1119_v4 = vld [vmem:[#allocation11 + $0x20] sm:$0xff]  }
  0x5d   :  { %981 = vmatprep.subr.bf16.mxu0 %v1318_v0  ;;  %376 = vmatpush1.bf16.msra.mxu1 %v1070_v18  ;;  %v448_v63 = vpack.c.bf16 %v1433_v61, %v1433_v61  ;;  %v1118_v3 = vld [vmem:[#allocation11 + $0x28] sm:$0xff]   ;;  %v1120_v5 = vld [vmem:[#allocation11 + $0x18] sm:$0xff]   ;;  %v1121_v6 = vld [vmem:[#allocation11 + $0x10] sm:$0xff]   ;;  %v225_v18 = vshrl.u32 %v224_v17, 7 }
  0x5e   :  { %377 = vmatprep.subr.bf16.mxu1 %v1072_v20  ;;  %v1122_v7 = vld [vmem:[#allocation11 + $0x8] sm:$0xff]   ;;  %v1123_v8 = vld [vmem:[#allocation11] sm:$0xff]  }
  0x5f   :  { %v222_v20 = vld [vmem:[%s1470_s6] sm:$0x7]  ;;  %s1321_s6 = smov [#allocation14]  }
  0x60   :  { %982 = vmatpush3.bf16.msra.mxu0 %v1067_v16 }
  0x61   :  { %983 = vmatprep.subr.bf16.mxu0 %v1318_v0  ;;  %378 = vmatpush1.bf16.msra.mxu1 %v1074_v21 }
  0x62   :  { %379 = vmatprep.subr.bf16.mxu1 %v1076_v23  ;;  %v230_v23 = vsub.s32 1, %v225_v18 }
  0x64   :  { %984 = vmatpush3.bf16.msra.mxu0 %v1071_v19  ;;  %v226_v19 = vsub.s32 0, %v225_v18 }
  0x65   :  { %985 = vmatprep.subr.bf16.mxu0 %v1318_v0  ;;  %380 = vmatpush1.bf16.msra.mxu1 %v1078_v24 }
  0x66   :  { %381 = vmatprep.subr.bf16.mxu1 %v1080_v26  ;;  %v227_v21 = vrot.slane %v222_v20, %v226_v19 }
  0x68   :  { %986 = vmatpush3.bf16.msra.mxu0 %v1075_v22 }
  0x69   :  { %987 = vmatprep.subr.bf16.mxu0 %v1318_v0  ;;  %382 = vmatpush1.bf16.msra.mxu1 %v1082_v28 }
  0x6a   :  { %626 = vmatprep.subr.bf16.mxu1 %v1086_v30 }
  0x6c   :  { %988 = vmatpush3.bf16.msra.mxu0 %v1079_v25 }
  0x6d   :  { %989 = vmatprep.subr.bf16.mxu0 %v1318_v0 }
  0x70   :  { %990 = vmatpush3.bf16.msra.mxu0 %v1083_v29 }
  0x71   :  { %995 = vmatprep.subr.bf16.mxu0 %v1318_v0 }
 0x113   :  { %v181_v32 = vpop.f32.mrf.mxu0 }
 0x114   :  { %v182_v33 = vadd.f32 %v874_v31, %v181_v32  ;;  %v231_v31 = vrot.slane %v222_v20, %v230_v23 }
 0x115   :  { %v973_v34 = vpop.f32.mrf.mxu0 }
 0x116   :  { %1124 = vtanh.f32 %v182_v33 }
 0x117   :  { %v184_v35 = vpop.f32.mrf.mxu0 }
 0x119   :  { %v974_v36 = vpop.f32.mrf.mxu0 }
 0x123   :  { %v1125_v37 = vpop.eup %1124 }
 0x124   :  { %v189_v40 = vpack.c.bf16 %v1125_v37, %v1125_v37 }
 0x126   :  { %400 = vmatmul.mubr.bf16.vlgmr.msra.gmra.mxu1 %v189_v40  ;;  %992 = vmatmul.mubr.bf16.vlgmr.msra.gmra.mxu0 %v189_v40 }
 0x127   :  { %627 = vmatpush1.bf16.msra.mxu1 %v1084_v38  ;;  %996 = vmatpush3.bf16.msra.mxu0 %v1108_v39 }
 0x128   :  { %628 = vmatprep.subr.bf16.mxu1 %v1089_v41  ;;  %658 = vmatprep.mubr.bf16.mxu1 %v1320_v27 }
 0x129   :  { %997 = vmatprep.subr.bf16.mxu0 %v1318_v0  ;;  %1011 = vmatprep.mubr.msk.bf16.mxu0 %vm1319_vm0, %v1318_v0 }
 0x12b   :  { %629 = vmatpush1.bf16.msra.mxu1 %v1087_v42  ;;  %998 = vmatpush3.bf16.msra.mxu0 %v1109_v43 }
 0x12c   :  { %630 = vmatprep.subr.bf16.mxu1 %v1092_v44  ;;  %999 = vmatprep.subr.bf16.mxu0 %v1318_v0  ;;  %v234_v44 = vsub.s32 2, %v225_v18 }
 0x12f   :  { %631 = vmatpush1.bf16.msra.mxu1 %v1090_v45  ;;  %1000 = vmatpush3.bf16.msra.mxu0 %v1110_v46 }
 0x130   :  { %632 = vmatprep.subr.bf16.mxu1 %v1095_v47  ;;  %1001 = vmatprep.subr.bf16.mxu0 %v1318_v0  ;;  %v235_v47 = vrot.slane %v222_v20, %v234_v44 }
 0x133   :  { %633 = vmatpush1.bf16.msra.mxu1 %v1093_v48  ;;  %1002 = vmatpush3.bf16.msra.mxu0 %v1111_v49 }
 0x134   :  { %634 = vmatprep.subr.bf16.mxu1 %v1098_v50  ;;  %1003 = vmatprep.subr.bf16.mxu0 %v1318_v0 }
 0x137   :  { %635 = vmatpush1.bf16.msra.mxu1 %v1096_v51  ;;  %1004 = vmatpush3.bf16.msra.mxu0 %v1112_v52 }
 0x138   :  { %636 = vmatprep.subr.bf16.mxu1 %v1101_v53  ;;  %1005 = vmatprep.subr.bf16.mxu0 %v1318_v0 }
 0x13b   :  { %637 = vmatpush1.bf16.msra.mxu1 %v1099_v54  ;;  %1006 = vmatpush3.bf16.msra.mxu0 %v1113_v55 }
 0x13c   :  { %638 = vmatprep.subr.bf16.mxu1 %v1104_v56  ;;  %1007 = vmatprep.subr.bf16.mxu0 %v1318_v0 }
 0x13f   :  { %639 = vmatpush1.bf16.msra.mxu1 %v1102_v57  ;;  %1008 = vmatpush3.bf16.msra.mxu0 %v1114_v58 }
 0x140   :  { %640 = vmatprep.subr.bf16.mxu1 %v1107_v59  ;;  %1009 = vmatprep.subr.bf16.mxu0 %v1318_v0 }
 0x143   :  { %641 = vmatpush1.bf16.msra.mxu1 %v1105_v60  ;;  %1010 = vmatpush3.bf16.msra.mxu0 %v1115_v62 }
 0x144   :  { %1015 = vmatprep.subr.bf16.mxu1 %v1318_v0 }
 0x146   :  { %659 = vmatmul.mubr.bf16.vlgmr.msra.gmra.mxu1 %v448_v63  ;;  %1012 = vmatmul.mubr.bf16.vlgmr.msra.gmra.mxu0 %v448_v63 }
 0x147   :  { %1031 = vmatprep.mubr.msk.bf16.mxu1 %vm1319_vm0, %v1318_v0  ;;  %1016 = vmatpush3.bf16.msra.mxu1 %v1116_v1 }
 0x148   :  { %1017 = vmatprep.subr.bf16.mxu1 %v1318_v0 }
 0x14b   :  { %1018 = vmatpush3.bf16.msra.mxu1 %v1117_v2 }
 0x14c   :  { %1019 = vmatprep.subr.bf16.mxu1 %v1318_v0 }
 0x14f   :  { %1020 = vmatpush3.bf16.msra.mxu1 %v1118_v3 }
 0x150   :  { %1021 = vmatprep.subr.bf16.mxu1 %v1318_v0 }
 0x153   :  { %1022 = vmatpush3.bf16.msra.mxu1 %v1119_v4 }
 0x154   :  { %1023 = vmatprep.subr.bf16.mxu1 %v1318_v0 }
 0x157   :  { %1024 = vmatpush3.bf16.msra.mxu1 %v1120_v5 }
 0x158   :  { %1025 = vmatprep.subr.bf16.mxu1 %v1318_v0 }
 0x15b   :  { %1026 = vmatpush3.bf16.msra.mxu1 %v1121_v6 }
 0x15c   :  { %1027 = vmatprep.subr.bf16.mxu1 %v1318_v0 }
 0x15f   :  { %1028 = vmatpush3.bf16.msra.mxu1 %v1122_v7 }
 0x160   :  { %1029 = vmatprep.subr.bf16.mxu1 %v1318_v0  ;;  %v481_v0 = vld [vmem:[%s1471_s7] sm:$0x7]  ;;  %s858_s7 = sshll.u32 %s1321_s6, 4  ;;  %s859_s7 = int_to_ptr.vmem [resolvable:$true] %s858_s7 }
 0x161   :  { %v486_v22 = vrot.slane %v481_v0, %v226_v19  ;;  %v490_v28 = vrot.slane %v481_v0, %v230_v23  ;;  %v494_v45 = vrot.slane %v481_v0, %v234_v44  ;;  %s1256_s12 = scalar_lea.vmem %s859_s7, 128  ;;  %p1261_p3 = scmp.lt.s32.totalorder %s859_s7, %s859_s7 }
 0x162   :  { %p1257_p2 = scmp.ne.s32.totalorder %s859_s7, %s1256_s12  ;;  %p1262_p4 = scmp.lt.s32.totalorder %s1256_s12, %s1256_s12 }
 0x163   :  { %1030 = vmatpush3.bf16.msra.mxu1 %v1123_v8 }
 0x164   :  { %p1263_p5 = por %p1262_p4, %p1261_p3 }
 0x166   :  { %p1264_p6 = pnand %p1263_p5, %p1257_p2 }
 0x1e6   :  { %v401_v9 = vpop.f32.mrf.mxu1  ;;  %v442_v10 = vpop.f32.mrf.mxu0 }
 0x1e7   :  { %v402_v26 = vadd.f32 %v401_v9, %v227_v21  ;;  %v443_v51 = vadd.f32 %v442_v10, %v235_v47 }
 0x1e8   :  { %v403_v11 = vpop.f32.mrf.mxu1  ;;  %v993_v12 = vpop.f32.mrf.mxu0 }
 0x1e9   :  { %v404_v39 = vadd.f32 %v403_v11, %v231_v31 }
 0x1ea   :  { %v405_v13 = vpop.f32.mrf.mxu1  ;;  %v445_v14 = vpop.f32.mrf.mxu0 }
 0x1ec   :  { %v406_v15 = vpop.f32.mrf.mxu1  ;;  %v994_v16 = vpop.f32.mrf.mxu0 }
 0x206   :  { %v660_v24 = vpop.f32.mrf.mxu1  ;;  %v701_v25 = vpop.f32.mrf.mxu0 }
 0x207   :  { %v661_v27 = vadd.f32 %v660_v24, %v486_v22  ;;  %v702_v49 = vadd.f32 %v701_v25, %v494_v45 }
 0x208   :  { %v662_v29 = vpop.f32.mrf.mxu1  ;;  %v1013_v30 = vpop.f32.mrf.mxu0 }
 0x209   :  { %v707_v32 = vadd.f32 %v661_v27, %v402_v26  ;;  %v663_v36 = vadd.f32 %v662_v29, %v490_v28 }
 0x20a   :  { %v664_v33 = vpop.f32.mrf.mxu1  ;;  %v704_v34 = vpop.f32.mrf.mxu0 }
 0x20b   :  { %v926_v35 = vmul.f32 -1.442695, %v707_v32  ;;  %v714_v40 = vadd.f32 %v663_v36, %v404_v39 }
 0x20c   :  { %v665_v37 = vpop.f32.mrf.mxu1  ;;  %v1014_v38 = vpop.f32.mrf.mxu0 }
 0x20d   :  { %1126 = vpow2.f32 %v926_v35  ;;  %v927_v41 = vmul.f32 -1.442695, %v714_v40 }
 0x20f   :  { %1128 = vpow2.f32 %v927_v41 }
 0x21a   :  { %v1127_v42 = vpop.eup %1126 }
 0x21b   :  { %v711_v43 = vadd.f32 1.0, %v1127_v42 }
 0x21c   :  { %v1129_v46 = vpop.eup %1128 }
 0x21d   :  { %1130 = vrcp.f32 %v711_v43  ;;  %v718_v48 = vadd.f32 1.0, %v1129_v46 }
 0x21f   :  { %1132 = vrcp.f32 %v718_v48 }
 0x22a   :  { %v1131_v50 = vpop.eup %1130 }
 0x22b   :  { %v721_v52 = vmul.f32 %v1131_v50, %v702_v49 }
 0x22c   :  { %v1133_v54 = vpop.eup %1132 }
 0x22d   :  { %v722_v53 = vadd.f32 %v721_v52, %v443_v51  ;;  %v724_v55 = vsub.f32 1.0, %v1133_v54  ;;  %v726_v58 = vmul.f32 %v1133_v54, %v1433_v61 }
 0x22f   :  { %1134 = vtanh.f32 %v722_v53 }
 0x23c   :  { %v1135_v56 = vpop.eup %1134 }
 0x23d   :  { %v725_v57 = vmul.f32 %v1135_v56, %v724_v55 }
 0x23f   :  { %v727_v59 = vadd.f32 %v726_v58, %v725_v57 }
 0x241   :  { %v728_v60 = vpack.c.bf16 %v727_v59, %v727_v59  ;;  %841 = vst [vmem:[#allocation14] sm:$0xff] %v727_v59 }
 0x243   :  { %1032 = vmatmul.mubr.bf16.vlgmr.msra.gmra.mxu1 %v728_v60 }
 0x244   :  { %1267 = shalt.err (!%p1264_p6)
}
 0x245   :  { %861 = dma.vmem_to_hbm [thread:$0]  %s859_s7, 128, %s1475_s11, [#allocation15]   ;;  %v928_v61 = vld [vmem:[%s1473_s9] ss:$0 sm:$0xff] }
 0x246   :  { %s1322_s16 = smov [#allocation13]  }
 0x247   :  { %s848_s4 = sshll.u32 %s1322_s16, 4  ;;  %s849_s4 = int_to_ptr.vmem [resolvable:$true] %s848_s4 }
 0x248   :  { %s1276_s17 = scalar_lea.vmem %s849_s4, 128  ;;  %p1281_p8 = scmp.lt.s32.totalorder %s849_s4, %s849_s4 }
 0x249   :  { %p1277_p7 = scmp.ne.s32.totalorder %s849_s4, %s1276_s17  ;;  %p1282_p9 = scmp.lt.s32.totalorder %s1276_s17, %s1276_s17 }
 0x24b   :  { %p1283_p10 = por %p1282_p9, %p1281_p8 }
 0x24d   :  { %p1284_p11 = pnand %p1283_p10, %p1277_p7 }
 0x303   :  { %v834_v62 = vpop.f32.mrf.mxu1 }
 0x304   :  { %v835_v63 = vadd.f32 %v928_v61, %v834_v62 }
 0x305   :  { %v1033_v1 = vpop.f32.mrf.mxu1 }
 0x306   :  { %840 = vst [vmem:[#allocation13] sm:$0xff] %v835_v63 }
 0x307   :  { %v837_v2 = vpop.f32.mrf.mxu1 }
 0x308   :  { %1287 = shalt.err (!%p1284_p11)
}
 0x309   :  { %851 = dma.vmem_to_hbm [thread:$0]  %s849_s4, 128, %s1474_s10, [#allocation4]   ;;  %v1034_v3 = vpop.f32.mrf.mxu1 }
 0x30a   :  { %1304 = dma.done.wait [#allocation4], 128  }
 0x30b   :  { %1305 = vsyncadd [#allocation4], 4294967168 }
 0x30c   :  { %1306 = dma.done.wait [#allocation15], 128  }
 0x30d   :  { %1307 = vsyncadd [#allocation15], 4294967168 }
 0x30e   :  { %868 = vsyncpa [#allocation3], 1 }
 0x30f   :  { %869 = vsyncpa [#allocation6], 1 }
 0x310   :  { %870 = vsyncpa [#allocation9], 1 }
 0x311   :  { %871 = vsyncpa [#allocation12], 1 }
 0x312   :  { %872 = vsyncpa [#allocation4], 1 }
 0x313   :  { %873 = vsyncpa [#allocation15], 1 }

// kernel: tpu_custom_call.1
= control target key start
LH: loop header
LB: loop body
LE: loop exit
PB: predicated region body
PF: predicated region fallthrough
CT: control target
= control target key end

     0   :  { %17 = vsyncpa [#allocation3], 0  ;;  %s1464_s0 = inlined_call_operand.hbm [shape: f32[8,32], index: 0, kind: input, shape index: {}]   ;;  %s1465_s1 = inlined_call_operand.hbm [shape: f32[8,128], index: 1, kind: input, shape index: {}]   ;;  %s1466_s2 = inlined_call_operand.hbm [shape: bf16[32,128], index: 2, kind: input, shape index: {}]   ;;  %s1467_s3 = inlined_call_operand.vmem [shape: f32[1,128], index: 3, kind: input, shape index: {}]   ;;  %s1468_s4 = inlined_call_operand.hbm [shape: bf16[128,384], index: 4, kind: input, shape index: {}]   ;;  %s1469_s5 = inlined_call_operand.hbm [shape: bf16[128,384], index: 5, kind: input, shape index: {}]   ;;  %s1470_s6 = inlined_call_operand.vmem [shape: f32[1,384], index: 6, kind: input, shape index: {}]   ;;  %s1471_s7 = inlined_call_operand.vmem [shape: f32[1,384], index: 7, kind: input, shape index: {}]   ;;  %s1472_s8 = inlined_call_operand.hbm [shape: bf16[128,128], index: 8, kind: input, shape index: {}]   ;;  %s1473_s9 = inlined_call_operand.vmem [shape: f32[1,128], index: 9, kind: input, shape index: {}]   ;;  %s1474_s10 = inlined_call_operand.hbm [shape: f32[8,128], index: 10, kind: output, shape index: {0}]   ;;  %s1475_s11 = inlined_call_operand.hbm [shape: f32[8,128], index: 11, kind: output, shape index: {1}]  }
   0x1   :  { %18 = vsyncpa [#allocation6], 0 }
   0x2   :  { %19 = vsyncpa [#allocation9], 0 }
   0x3   :  { %20 = vsyncpa [#allocation12], 0 }
   0x4   :  { %21 = vsyncpa [#allocation4], 0 }
   0x5   :  { %22 = vsyncpa [#allocation15], 0  ;;  %s1308_s17 = smov [#allocation5]   ;;  %s1309_s19 = smov [#allocation8]  }
   0x6   :  { %s39_s18 = sshll.u32 %s1308_s17, 4  ;;  %s62_s20 = sshll.u32 %s1309_s19, 4  ;;  %s40_s18 = int_to_ptr.vmem [resolvable:$true] %s39_s18  ;;  %s63_s20 = int_to_ptr.vmem [resolvable:$true] %s62_s20 }
   0x7   :  { %s1144_s21 = scalar_lea.vmem %s40_s18, 128  ;;  %p1149_p1 = scmp.lt.s32.totalorder %s40_s18, %s40_s18 }
   0x8   :  { %p1145_p0 = scmp.ne.s32.totalorder %s40_s18, %s1144_s21  ;;  %p1150_p2 = scmp.lt.s32.totalorder %s1144_s21, %s1144_s21 }
   0xa   :  { %p1151_p3 = por %p1150_p2, %p1149_p1 }
   0xc   :  { %p1152_p4 = pnand %p1151_p3, %p1145_p0 }
   0xe   :  { %1155 = shalt.err (!%p1152_p4)
}
   0xf   :  { %42 = dma.hbm_to_vmem [thread:$0]  %s1465_s1, 128, %s40_s18, [#allocation6]  }
  0x10   :  { %s1164_s24 = scalar_lea.vmem %s63_s20, 3072  ;;  %p1169_p6 = scmp.lt.s32.totalorder %s63_s20, %s63_s20 }
  0x11   :  { %p1165_p5 = scmp.ne.s32.totalorder %s63_s20, %s1164_s24  ;;  %p1170_p7 = scmp.lt.s32.totalorder %s1164_s24, %s1164_s24 }
  0x13   :  { %p1171_p8 = por %p1170_p7, %p1169_p6 }
  0x15   :  { %p1172_p9 = pnand %p1171_p8, %p1165_p5 }
  0x17   :  { %1175 = shalt.err (!%p1172_p9)
}
  0x18   :  { %s1310_s25 = smov 192   ;;  %s1311_s26 = smov 12  }
  0x19   :  { %68 = dma.hbm_to_vmem [thread:$0]  %s1468_s4, 3072, %s63_s20, [#allocation9], %s1310_s25, %s1310_s25, %s1311_s26  }
  0x1a   :  { %s1312_s29 = smov [#allocation2]   ;;  %s1313_s12 = smov [#allocation7]  }
  0x1b   :  { %s29_s30 = sshll.u32 %s1312_s29, 4  ;;  %s48_s1 = sshll.u32 %s1313_s12, 4  ;;  %s30_s30 = int_to_ptr.vmem [resolvable:$true] %s29_s30  ;;  %s49_s1 = int_to_ptr.vmem [resolvable:$true] %s48_s1 }
  0x1c   :  { %s1184_s13 = scalar_lea.vmem %s30_s30, 128  ;;  %p1189_p11 = scmp.lt.s32.totalorder %s30_s30, %s30_s30 }
  0x1d   :  { %p1185_p10 = scmp.ne.s32.totalorder %s30_s30, %s1184_s13  ;;  %p1190_p12 = scmp.lt.s32.totalorder %s1184_s13, %s1184_s13 }
  0x1f   :  { %p1191_p13 = por %p1190_p12, %p1189_p11 }
  0x21   :  { %p1192_p0 = pnand %p1191_p13, %p1185_p10 }
  0x23   :  { %1195 = shalt.err (!%p1192_p0)
}
  0x24   :  { %32 = dma.hbm_to_vmem [thread:$0]  %s1464_s0, 128, %s30_s30, [#allocation3]  }
  0x25   :  { %s1204_s16 = scalar_lea.vmem %s49_s1, 256  ;;  %p1209_p2 = scmp.lt.s32.totalorder %s49_s1, %s49_s1 }
  0x26   :  { %p1205_p1 = scmp.ne.s32.totalorder %s49_s1, %s1204_s16  ;;  %p1210_p3 = scmp.lt.s32.totalorder %s1204_s16, %s1204_s16 }
  0x28   :  { %p1211_p4 = por %p1210_p3, %p1209_p2 }
  0x2a   :  { %p1212_p5 = pnand %p1211_p4, %p1205_p1 }
  0x2c   :  { %1215 = shalt.err (!%p1212_p5)
}
  0x2d   :  { %s1314_s4 = smov 64   ;;  %s1315_s17 = smov 4  }
  0x2e   :  { %54 = dma.hbm_to_vmem [thread:$0]  %s1466_s2, 256, %s49_s1, [#allocation6], %s1314_s4, %s1314_s4, %s1315_s17  }
  0x2f   :  { %s1316_s20 = smov [#allocation10]   ;;  %s1317_s22 = smov [#allocation11]  }
  0x30   :  { %s74_s21 = sshll.u32 %s1316_s20, 4  ;;  %s90_s23 = sshll.u32 %s1317_s22, 4  ;;  %s75_s21 = int_to_ptr.vmem [resolvable:$true] %s74_s21  ;;  %s91_s23 = int_to_ptr.vmem [resolvable:$true] %s90_s23 }
  0x31   :  { %s1224_s0 = scalar_lea.vmem %s75_s21, 3072  ;;  %p1229_p7 = scmp.lt.s32.totalorder %s75_s21, %s75_s21 }
  0x32   :  { %p1225_p6 = scmp.ne.s32.totalorder %s75_s21, %s1224_s0  ;;  %p1230_p8 = scmp.lt.s32.totalorder %s1224_s0, %s1224_s0 }
  0x34   :  { %p1231_p9 = por %p1230_p8, %p1229_p7 }
  0x36   :  { %p1232_p10 = pnand %p1231_p9, %p1225_p6 }
  0x38   :  { %1235 = shalt.err (!%p1232_p10)
}
  0x39   :  { %80 = dma.hbm_to_vmem [thread:$0]  %s1469_s5, 3072, %s75_s21, [#allocation9], %s1310_s25, %s1310_s25, %s1311_s26  }
  0x3a   :  { %s1244_s2 = scalar_lea.vmem %s91_s23, 1024  ;;  %p1249_p12 = scmp.lt.s32.totalorder %s91_s23, %s91_s23 }
  0x3b   :  { %p1245_p11 = scmp.ne.s32.totalorder %s91_s23, %s1244_s2  ;;  %p1250_p13 = scmp.lt.s32.totalorder %s1244_s2, %s1244_s2 }
  0x3d   :  { %p1251_p0 = por %p1250_p13, %p1249_p12 }
  0x3f   :  { %p1252_p1 = pnand %p1251_p0, %p1245_p11 }
  0x41   :  { %1255 = shalt.err (!%p1252_p1)
}
  0x42   :  { %96 = dma.hbm_to_vmem [thread:$0]  %s1472_s8, 1024, %s91_s23, [#allocation12], %s1314_s4, %s1314_s4, %s1315_s17  }
  0x43   :  { %1296 = dma.done.wait [#allocation3], 128  }
  0x44   :  { %1297 = vsyncadd [#allocation3], 4294967168 }
  0x45   :  { %1298 = dma.done.wait [#allocation6], 384  }
  0x46   :  { %1299 = vsyncadd [#allocation6], 4294966912 }
  0x47   :  { %1300 = dma.done.wait [#allocation9], 6144  }
  0x48   :  { %1301 = vsyncadd [#allocation9], 4294961152 }
  0x49   :  { %1302 = dma.done.wait [#allocation12], 1024  }
  0x4a   :  { %1303 = vsyncadd [#allocation12], 4294966272  ;;  %v1318_v0 = vmov 0.0   ;;  %vm1319_vm0 = vmmov 0   ;;  %v1050_v1 = vld [vmem:[#allocation7 + $0x8] sm:$0xff]   ;;  %v1051_v2 = vld [vmem:[#allocation7] sm:$0xff]  }
  0x4b   :  { %967 = vmatprep.subr.bf16.mxu0 %v1318_v0  ;;  %971 = vmatprep.mubr.msk.bf16.mxu0 %vm1319_vm0, %v1318_v0  ;;  %v118_v3 = vld [vmem:[#allocation2] sm:$0xff]  ;;  %v1052_v4 = vld [vmem:[#allocation8 + $0xac] ss:$12 sps:$4 sm:$0xff]   ;;  %v1054_v5 = vld [vmem:[#allocation8 + $0xa8] ss:$12 sps:$4 sm:$0xff]   ;;  %vm143_vm1 = vcmask 261120  }
  0x4c   :  { %968 = vmatpush3.bf16.msra.mxu0 %v1050_v1  ;;  %v119_v6 = vpack.c.bf16 %v118_v3, %v118_v3  ;;  %367 = vmatprep.subr.bf16.mxu1 %v1052_v4  ;;  %v1055_v7 = vld [vmem:[#allocation8 + $0xb0] ss:$12 sps:$4 sm:$0xff]   ;;  %v1056_v8 = vld [vmem:[#allocation8 + $0x94] ss:$12 sps:$4 sm:$0xff]   ;;  %v1059_v11 = vld [vmem:[#allocation8 + $0x98] ss:$12 sps:$4 sm:$0xff]  }
  0x4d   :  { %969 = vmatprep.subr.bf16.mxu0 %v1318_v0  ;;  %368 = vmatpush1.bf16.msra.mxu1 %v1054_v5  ;;  %v1058_v9 = vld [vmem:[#allocation8 + $0x90] ss:$12 sps:$4 sm:$0xff]   ;;  %v1062_v12 = vld [vmem:[#allocation8 + $0x78] ss:$12 sps:$4 sm:$0xff]   ;;  %v1063_v14 = vld [vmem:[#allocation8 + $0x80] ss:$12 sps:$4 sm:$0xff]  }
  0x4e   :  { %369 = vmatprep.subr.bf16.mxu1 %v1056_v8  ;;  %v1060_v10 = vld [vmem:[#allocation8 + $0x7c] ss:$12 sps:$4 sm:$0xff]   ;;  %v1064_v13 = vld [vmem:[#allocation8 + $0x64] ss:$12 sps:$4 sm:$0xff]   ;;  %v1066_v15 = vld [vmem:[#allocation8 + $0x60] ss:$12 sps:$4 sm:$0xff]  }
  0x4f   :  { %v1067_v16 = vld [vmem:[#allocation8 + $0x68] ss:$12 sps:$4 sm:$0xff]   ;;  %v1068_v17 = vld [vmem:[#allocation8 + $0x4c] ss:$12 sps:$4 sm:$0xff]   ;;  %v1071_v19 = vld [vmem:[#allocation8 + $0x50] ss:$12 sps:$4 sm:$0xff]  }
  0x50   :  { %970 = vmatpush3.bf16.msra.mxu0 %v1051_v2  ;;  %v1070_v18 = vld [vmem:[#allocation8 + $0x48] ss:$12 sps:$4 sm:$0xff]   ;;  %v1074_v21 = vld [vmem:[#allocation8 + $0x30] ss:$12 sps:$4 sm:$0xff]   ;;  %v1075_v22 = vld [vmem:[#allocation8 + $0x38] ss:$12 sps:$4 sm:$0xff]  }
  0x51   :  { %975 = vmatprep.subr.bf16.mxu0 %v1318_v0  ;;  %370 = vmatpush1.bf16.msra.mxu1 %v1058_v9  ;;  %v1072_v20 = vld [vmem:[#allocation8 + $0x34] ss:$12 sps:$4 sm:$0xff]   ;;  %v1076_v23 = vld [vmem:[#allocation8 + $0x1c] ss:$12 sps:$4 sm:$0xff]   ;;  %v1078_v24 = vld [vmem:[#allocation8 + $0x18] ss:$12 sps:$4 sm:$0xff]  }
  0x52   :  { %371 = vmatprep.subr.bf16.mxu1 %v1060_v10  ;;  %v1079_v25 = vld [vmem:[#allocation8 + $0x20] ss:$12 sps:$4 sm:$0xff]   ;;  %v1080_v26 = vld [vmem:[#allocation8 + $0x4] ss:$12 sps:$4 sm:$0xff]   ;;  %v1320_v27 = vmov 0   ;;  %v1116_v1 = vld [vmem:[#allocation11 + $0x38] sm:$0xff]  }
  0x53   :  { %972 = vmatmul.mubr.msk.bf16.vlgmr.msra.gmra.mxu0 %vm143_vm1, %v119_v6  ;;  %399 = vmatprep.mubr.bf16.mxu1 %v1320_v27  ;;  %v1082_v28 = vld [vmem:[#allocation8] ss:$12 sps:$4 sm:$0xff]   ;;  %v1083_v29 = vld [vmem:[#allocation8 + $0x8] ss:$12 sps:$4 sm:$0xff]   ;;  %v1108_v39 = vld [vmem:[#allocation10 + $0xb0] ss:$12 sps:$4 sm:$0xff]  }
  0x54   :  { %976 = vmatpush3.bf16.msra.mxu0 %v1055_v7  ;;  %991 = vmatprep.mubr.msk.bf16.mxu0 %vm1319_vm0, %v1318_v0  ;;  %v1086_v30 = vld [vmem:[#allocation10 + $0xac] ss:$12 sps:$4 sm:$0xff]   ;;  %v874_v31 = vld [vmem:[%s1467_s3] ss:$0 sm:$0xff]  ;;  %v1084_v38 = vld [vmem:[#allocation10 + $0xa8] ss:$12 sps:$4 sm:$0xff]  }
  0x55   :  { %977 = vmatprep.subr.bf16.mxu0 %v1318_v0  ;;  %372 = vmatpush1.bf16.msra.mxu1 %v1062_v12  ;;  %v1089_v41 = vld [vmem:[#allocation10 + $0x94] ss:$12 sps:$4 sm:$0xff]   ;;  %v1087_v42 = vld [vmem:[#allocation10 + $0x90] ss:$12 sps:$4 sm:$0xff]   ;;  %v1109_v43 = vld [vmem:[#allocation10 + $0x98] ss:$12 sps:$4 sm:$0xff]  }
  0x56   :  { %373 = vmatprep.subr.bf16.mxu1 %v1064_v13  ;;  %v1092_v44 = vld [vmem:[#allocation10 + $0x7c] ss:$12 sps:$4 sm:$0xff]   ;;  %v1090_v45 = vld [vmem:[#allocation10 + $0x78] ss:$12 sps:$4 sm:$0xff]   ;;  %v1110_v46 = vld [vmem:[#allocation10 + $0x80] ss:$12 sps:$4 sm:$0xff]  }
  0x57   :  { %v1095_v47 = vld [vmem:[#allocation10 + $0x64] ss:$12 sps:$4 sm:$0xff]   ;;  %v1093_v48 = vld [vmem:[#allocation10 + $0x60] ss:$12 sps:$4 sm:$0xff]   ;;  %v1111_v49 = vld [vmem:[#allocation10 + $0x68] ss:$12 sps:$4 sm:$0xff]  }
  0x58   :  { %978 = vmatpush3.bf16.msra.mxu0 %v1059_v11  ;;  %v1098_v50 = vld [vmem:[#allocation10 + $0x4c] ss:$12 sps:$4 sm:$0xff]   ;;  %v1096_v51 = vld [vmem:[#allocation10 + $0x48] ss:$12 sps:$4 sm:$0xff]   ;;  %v1112_v52 = vld [vmem:[#allocation10 + $0x50] ss:$12 sps:$4 sm:$0xff]  }
  0x59   :  { %979 = vmatprep.subr.bf16.mxu0 %v1318_v0  ;;  %374 = vmatpush1.bf16.msra.mxu1 %v1066_v15  ;;  %v1101_v53 = vld [vmem:[#allocation10 + $0x34] ss:$12 sps:$4 sm:$0xff]   ;;  %v1099_v54 = vld [vmem:[#allocation10 + $0x30] ss:$12 sps:$4 sm:$0xff]   ;;  %v1113_v55 = vld [vmem:[#allocation10 + $0x38] ss:$12 sps:$4 sm:$0xff]  }
  0x5a   :  { %375 = vmatprep.subr.bf16.mxu1 %v1068_v17  ;;  %v1104_v56 = vld [vmem:[#allocation10 + $0x1c] ss:$12 sps:$4 sm:$0xff]   ;;  %v1102_v57 = vld [vmem:[#allocation10 + $0x18] ss:$12 sps:$4 sm:$0xff]   ;;  %v1114_v58 = vld [vmem:[#allocation10 + $0x20] ss:$12 sps:$4 sm:$0xff]   ;;  %v224_v17 = vlaneseq }
  0x5b   :  { %v1107_v59 = vld [vmem:[#allocation10 + $0x4] ss:$12 sps:$4 sm:$0xff]   ;;  %v1105_v60 = vld [vmem:[#allocation10] ss:$12 sps:$4 sm:$0xff]   ;;  %v1115_v62 = vld [vmem:[#allocation10 + $0x8] ss:$12 sps:$4 sm:$0xff]  }
  0x5c   :  { %980 = vmatpush3.bf16.msra.mxu0 %v1063_v14  ;;  %v1433_v61 = vld [vmem:[#allocation5] sm:$0xff]  ;;  %v1117_v2 = vld [vmem:[#allocation11 + $0x30] sm:$0xff]   ;;  %v1119_v4 = vld [vmem:[#allocation11 + $0x20] sm:$0xff]  }
  0x5d   :  { %981 = vmatprep.subr.bf16.mxu0 %v1318_v0  ;;  %376 = vmatpush1.bf16.msra.mxu1 %v1070_v18  ;;  %v448_v63 = vpack.c.bf16 %v1433_v61, %v1433_v61  ;;  %v1118_v3 = vld [vmem:[#allocation11 + $0x28] sm:$0xff]   ;;  %v1120_v5 = vld [vmem:[#allocation11 + $0x18] sm:$0xff]   ;;  %v1121_v6 = vld [vmem:[#allocation11 + $0x10] sm:$0xff]   ;;  %v225_v18 = vshrl.u32 %v224_v17, 7 }
  0x5e   :  { %377 = vmatprep.subr.bf16.mxu1 %v1072_v20  ;;  %v1122_v7 = vld [vmem:[#allocation11 + $0x8] sm:$0xff]   ;;  %v1123_v8 = vld [vmem:[#allocation11] sm:$0xff]  }
  0x5f   :  { %v222_v20 = vld [vmem:[%s1470_s6] sm:$0x7]  ;;  %s1321_s6 = smov [#allocation14]  }
  0x60   :  { %982 = vmatpush3.bf16.msra.mxu0 %v1067_v16 }
  0x61   :  { %983 = vmatprep.subr.bf16.mxu0 %v1318_v0  ;;  %378 = vmatpush1.bf16.msra.mxu1 %v1074_v21 }
  0x62   :  { %379 = vmatprep.subr.bf16.mxu1 %v1076_v23  ;;  %v230_v23 = vsub.s32 1, %v225_v18 }
  0x64   :  { %984 = vmatpush3.bf16.msra.mxu0 %v1071_v19  ;;  %v226_v19 = vsub.s32 0, %v225_v18 }
  0x65   :  { %985 = vmatprep.subr.bf16.mxu0 %v1318_v0  ;;  %380 = vmatpush1.bf16.msra.mxu1 %v1078_v24 }
  0x66   :  { %381 = vmatprep.subr.bf16.mxu1 %v1080_v26  ;;  %v227_v21 = vrot.slane %v222_v20, %v226_v19 }
  0x68   :  { %986 = vmatpush3.bf16.msra.mxu0 %v1075_v22 }
  0x69   :  { %987 = vmatprep.subr.bf16.mxu0 %v1318_v0  ;;  %382 = vmatpush1.bf16.msra.mxu1 %v1082_v28 }
  0x6a   :  { %626 = vmatprep.subr.bf16.mxu1 %v1086_v30 }
  0x6c   :  { %988 = vmatpush3.bf16.msra.mxu0 %v1079_v25 }
  0x6d   :  { %989 = vmatprep.subr.bf16.mxu0 %v1318_v0 }
  0x70   :  { %990 = vmatpush3.bf16.msra.mxu0 %v1083_v29 }
  0x71   :  { %995 = vmatprep.subr.bf16.mxu0 %v1318_v0 }
 0x113   :  { %v181_v32 = vpop.f32.mrf.mxu0 }
 0x114   :  { %v182_v33 = vadd.f32 %v874_v31, %v181_v32  ;;  %v231_v31 = vrot.slane %v222_v20, %v230_v23 }
 0x115   :  { %v973_v34 = vpop.f32.mrf.mxu0 }
 0x116   :  { %1124 = vtanh.f32 %v182_v33 }
 0x117   :  { %v184_v35 = vpop.f32.mrf.mxu0 }
 0x119   :  { %v974_v36 = vpop.f32.mrf.mxu0 }
 0x123   :  { %v1125_v37 = vpop.eup %1124 }
 0x124   :  { %v189_v40 = vpack.c.bf16 %v1125_v37, %v1125_v37 }
 0x126   :  { %400 = vmatmul.mubr.bf16.vlgmr.msra.gmra.mxu1 %v189_v40  ;;  %992 = vmatmul.mubr.bf16.vlgmr.msra.gmra.mxu0 %v189_v40 }
 0x127   :  { %627 = vmatpush1.bf16.msra.mxu1 %v1084_v38  ;;  %996 = vmatpush3.bf16.msra.mxu0 %v1108_v39 }
 0x128   :  { %628 = vmatprep.subr.bf16.mxu1 %v1089_v41  ;;  %658 = vmatprep.mubr.bf16.mxu1 %v1320_v27 }
 0x129   :  { %997 = vmatprep.subr.bf16.mxu0 %v1318_v0  ;;  %1011 = vmatprep.mubr.msk.bf16.mxu0 %vm1319_vm0, %v1318_v0 }
 0x12b   :  { %629 = vmatpush1.bf16.msra.mxu1 %v1087_v42  ;;  %998 = vmatpush3.bf16.msra.mxu0 %v1109_v43 }
 0x12c   :  { %630 = vmatprep.subr.bf16.mxu1 %v1092_v44  ;;  %999 = vmatprep.subr.bf16.mxu0 %v1318_v0  ;;  %v234_v44 = vsub.s32 2, %v225_v18 }
 0x12f   :  { %631 = vmatpush1.bf16.msra.mxu1 %v1090_v45  ;;  %1000 = vmatpush3.bf16.msra.mxu0 %v1110_v46 }
 0x130   :  { %632 = vmatprep.subr.bf16.mxu1 %v1095_v47  ;;  %1001 = vmatprep.subr.bf16.mxu0 %v1318_v0  ;;  %v235_v47 = vrot.slane %v222_v20, %v234_v44 }
 0x133   :  { %633 = vmatpush1.bf16.msra.mxu1 %v1093_v48  ;;  %1002 = vmatpush3.bf16.msra.mxu0 %v1111_v49 }
 0x134   :  { %634 = vmatprep.subr.bf16.mxu1 %v1098_v50  ;;  %1003 = vmatprep.subr.bf16.mxu0 %v1318_v0 }
 0x137   :  { %635 = vmatpush1.bf16.msra.mxu1 %v1096_v51  ;;  %1004 = vmatpush3.bf16.msra.mxu0 %v1112_v52 }
 0x138   :  { %636 = vmatprep.subr.bf16.mxu1 %v1101_v53  ;;  %1005 = vmatprep.subr.bf16.mxu0 %v1318_v0 }
 0x13b   :  { %637 = vmatpush1.bf16.msra.mxu1 %v1099_v54  ;;  %1006 = vmatpush3.bf16.msra.mxu0 %v1113_v55 }
 0x13c   :  { %638 = vmatprep.subr.bf16.mxu1 %v1104_v56  ;;  %1007 = vmatprep.subr.bf16.mxu0 %v1318_v0 }
 0x13f   :  { %639 = vmatpush1.bf16.msra.mxu1 %v1102_v57  ;;  %1008 = vmatpush3.bf16.msra.mxu0 %v1114_v58 }
 0x140   :  { %640 = vmatprep.subr.bf16.mxu1 %v1107_v59  ;;  %1009 = vmatprep.subr.bf16.mxu0 %v1318_v0 }
 0x143   :  { %641 = vmatpush1.bf16.msra.mxu1 %v1105_v60  ;;  %1010 = vmatpush3.bf16.msra.mxu0 %v1115_v62 }
 0x144   :  { %1015 = vmatprep.subr.bf16.mxu1 %v1318_v0 }
 0x146   :  { %659 = vmatmul.mubr.bf16.vlgmr.msra.gmra.mxu1 %v448_v63  ;;  %1012 = vmatmul.mubr.bf16.vlgmr.msra.gmra.mxu0 %v448_v63 }
 0x147   :  { %1031 = vmatprep.mubr.msk.bf16.mxu1 %vm1319_vm0, %v1318_v0  ;;  %1016 = vmatpush3.bf16.msra.mxu1 %v1116_v1 }
 0x148   :  { %1017 = vmatprep.subr.bf16.mxu1 %v1318_v0 }
 0x14b   :  { %1018 = vmatpush3.bf16.msra.mxu1 %v1117_v2 }
 0x14c   :  { %1019 = vmatprep.subr.bf16.mxu1 %v1318_v0 }
 0x14f   :  { %1020 = vmatpush3.bf16.msra.mxu1 %v1118_v3 }
 0x150   :  { %1021 = vmatprep.subr.bf16.mxu1 %v1318_v0 }
 0x153   :  { %1022 = vmatpush3.bf16.msra.mxu1 %v1119_v4 }
 0x154   :  { %1023 = vmatprep.subr.bf16.mxu1 %v1318_v0 }
 0x157   :  { %1024 = vmatpush3.bf16.msra.mxu1 %v1120_v5 }
 0x158   :  { %1025 = vmatprep.subr.bf16.mxu1 %v1318_v0 }
 0x15b   :  { %1026 = vmatpush3.bf16.msra.mxu1 %v1121_v6 }
 0x15c   :  { %1027 = vmatprep.subr.bf16.mxu1 %v1318_v0 }
 0x15f   :  { %1028 = vmatpush3.bf16.msra.mxu1 %v1122_v7 }
 0x160   :  { %1029 = vmatprep.subr.bf16.mxu1 %v1318_v0  ;;  %v481_v0 = vld [vmem:[%s1471_s7] sm:$0x7]  ;;  %s858_s7 = sshll.u32 %s1321_s6, 4  ;;  %s859_s7 = int_to_ptr.vmem [resolvable:$true] %s858_s7 }
 0x161   :  { %v486_v22 = vrot.slane %v481_v0, %v226_v19  ;;  %v490_v28 = vrot.slane %v481_v0, %v230_v23  ;;  %v494_v45 = vrot.slane %v481_v0, %v234_v44  ;;  %s1256_s12 = scalar_lea.vmem %s859_s7, 128  ;;  %p1261_p3 = scmp.lt.s32.totalorder %s859_s7, %s859_s7 }
 0x162   :  { %p1257_p2 = scmp.ne.s32.totalorder %s859_s7, %s1256_s12  ;;  %p1262_p4 = scmp.lt.s32.totalorder %s1256_s12, %s1256_s12 }
 0x163   :  { %1030 = vmatpush3.bf16.msra.mxu1 %v1123_v8 }
 0x164   :  { %p1263_p5 = por %p1262_p4, %p1261_p3 }
 0x166   :  { %p1264_p6 = pnand %p1263_p5, %p1257_p2 }
 0x1e6   :  { %v401_v9 = vpop.f32.mrf.mxu1  ;;  %v442_v10 = vpop.f32.mrf.mxu0 }
 0x1e7   :  { %v402_v26 = vadd.f32 %v401_v9, %v227_v21  ;;  %v443_v51 = vadd.f32 %v442_v10, %v235_v47 }
 0x1e8   :  { %v403_v11 = vpop.f32.mrf.mxu1  ;;  %v993_v12 = vpop.f32.mrf.mxu0 }
 0x1e9   :  { %v404_v39 = vadd.f32 %v403_v11, %v231_v31 }
 0x1ea   :  { %v405_v13 = vpop.f32.mrf.mxu1  ;;  %v445_v14 = vpop.f32.mrf.mxu0 }
 0x1ec   :  { %v406_v15 = vpop.f32.mrf.mxu1  ;;  %v994_v16 = vpop.f32.mrf.mxu0 }
 0x206   :  { %v660_v24 = vpop.f32.mrf.mxu1  ;;  %v701_v25 = vpop.f32.mrf.mxu0 }
 0x207   :  { %v661_v27 = vadd.f32 %v660_v24, %v486_v22  ;;  %v702_v49 = vadd.f32 %v701_v25, %v494_v45 }
 0x208   :  { %v662_v29 = vpop.f32.mrf.mxu1  ;;  %v1013_v30 = vpop.f32.mrf.mxu0 }
 0x209   :  { %v707_v32 = vadd.f32 %v661_v27, %v402_v26  ;;  %v663_v36 = vadd.f32 %v662_v29, %v490_v28 }
 0x20a   :  { %v664_v33 = vpop.f32.mrf.mxu1  ;;  %v704_v34 = vpop.f32.mrf.mxu0 }
 0x20b   :  { %v926_v35 = vmul.f32 -1.442695, %v707_v32  ;;  %v714_v40 = vadd.f32 %v663_v36, %v404_v39 }
 0x20c   :  { %v665_v37 = vpop.f32.mrf.mxu1  ;;  %v1014_v38 = vpop.f32.mrf.mxu0 }
 0x20d   :  { %1126 = vpow2.f32 %v926_v35  ;;  %v927_v41 = vmul.f32 -1.442695, %v714_v40 }
 0x20f   :  { %1128 = vpow2.f32 %v927_v41 }
 0x21a   :  { %v1127_v42 = vpop.eup %1126 }
 0x21b   :  { %v711_v43 = vadd.f32 1.0, %v1127_v42 }
 0x21c   :  { %v1129_v46 = vpop.eup %1128 }
 0x21d   :  { %1130 = vrcp.f32 %v711_v43  ;;  %v718_v48 = vadd.f32 1.0, %v1129_v46 }
 0x21f   :  { %1132 = vrcp.f32 %v718_v48 }
 0x22a   :  { %v1131_v50 = vpop.eup %1130 }
 0x22b   :  { %v721_v52 = vmul.f32 %v1131_v50, %v702_v49 }
 0x22c   :  { %v1133_v54 = vpop.eup %1132 }
 0x22d   :  { %v722_v53 = vadd.f32 %v721_v52, %v443_v51  ;;  %v724_v55 = vsub.f32 1.0, %v1133_v54  ;;  %v726_v58 = vmul.f32 %v1133_v54, %v1433_v61 }
 0x22f   :  { %1134 = vtanh.f32 %v722_v53 }
 0x23c   :  { %v1135_v56 = vpop.eup %1134 }
 0x23d   :  { %v725_v57 = vmul.f32 %v1135_v56, %v724_v55 }
 0x23f   :  { %v727_v59 = vadd.f32 %v726_v58, %v725_v57 }
 0x241   :  { %v728_v60 = vpack.c.bf16 %v727_v59, %v727_v59  ;;  %841 = vst [vmem:[#allocation14] sm:$0xff] %v727_v59 }
 0x243   :  { %1032 = vmatmul.mubr.bf16.vlgmr.msra.gmra.mxu1 %v728_v60 }
 0x244   :  { %1267 = shalt.err (!%p1264_p6)
}
 0x245   :  { %861 = dma.vmem_to_hbm [thread:$0]  %s859_s7, 128, %s1475_s11, [#allocation15]   ;;  %v928_v61 = vld [vmem:[%s1473_s9] ss:$0 sm:$0xff] }
 0x246   :  { %s1322_s16 = smov [#allocation13]  }
 0x247   :  { %s848_s4 = sshll.u32 %s1322_s16, 4  ;;  %s849_s4 = int_to_ptr.vmem [resolvable:$true] %s848_s4 }
 0x248   :  { %s1276_s17 = scalar_lea.vmem %s849_s4, 128  ;;  %p1281_p8 = scmp.lt.s32.totalorder %s849_s4, %s849_s4 }
 0x249   :  { %p1277_p7 = scmp.ne.s32.totalorder %s849_s4, %s1276_s17  ;;  %p1282_p9 = scmp.lt.s32.totalorder %s1276_s17, %s1276_s17 }
 0x24b   :  { %p1283_p10 = por %p1282_p9, %p1281_p8 }
 0x24d   :  { %p1284_p11 = pnand %p1283_p10, %p1277_p7 }
 0x303   :  { %v834_v62 = vpop.f32.mrf.mxu1 }
 0x304   :  { %v835_v63 = vadd.f32 %v928_v61, %v834_v62 }
 0x305   :  { %v1033_v1 = vpop.f32.mrf.mxu1 }
 0x306   :  { %840 = vst [vmem:[#allocation13] sm:$0xff] %v835_v63 }
 0x307   :  { %v837_v2 = vpop.f32.mrf.mxu1 }
 0x308   :  { %1287 = shalt.err (!%p1284_p11)
}
 0x309   :  { %851 = dma.vmem_to_hbm [thread:$0]  %s849_s4, 128, %s1474_s10, [#allocation4]   ;;  %v1034_v3 = vpop.f32.mrf.mxu1 }
 0x30a   :  { %1304 = dma.done.wait [#allocation4], 128  }
 0x30b   :  { %1305 = vsyncadd [#allocation4], 4294967168 }
 0x30c   :  { %1306 = dma.done.wait [#allocation15], 128  }
 0x30d   :  { %1307 = vsyncadd [#allocation15], 4294967168 }
 0x30e   :  { %868 = vsyncpa [#allocation3], 1 }
 0x30f   :  { %869 = vsyncpa [#allocation6], 1 }
 0x310   :  { %870 = vsyncpa [#allocation9], 1 }
 0x311   :  { %871 = vsyncpa [#allocation12], 1 }
 0x312   :  { %872 = vsyncpa [#allocation4], 1 }
 0x313   :  { %873 = vsyncpa [#allocation15], 1 }

</bundles_post_ra>
